<compile_context>
chip_gen: v7x
topology: tpu7x:2x2x1
jax: 0.10.0
libtpu: 0.0.40
codegen_flags: <defaults>
</compile_context>

<pallas_src>
import functools

import jax
import jax.numpy as jnp
from jax import lax
from jax.experimental import pallas as pl
from jax.experimental.pallas import tpu as pltpu


def _round_up(x, m):
    return (x + m - 1) // m * m


def _num_tensorcores():
    """2 on v7x (megacore batch split pays off), else 1."""
    try:
        kind = jax.devices()[0].device_kind.lower()
        if "v7" in kind or "7x" in kind:
            return 2
    except Exception:
        pass
    return 1


def _vmem_capacity_bytes():
    try:
        return int(pltpu.get_tpu_info().vmem_capacity_bytes)
    except Exception:
        return 128 * 1024 * 1024


def _pick_time_block(T, bb, Dp, Hp, Op, itemsize, vmem_cap):
    """Largest tb (<=64) whose per-step VMEM footprint fits the chip budget.
    Returns (tb, T_padded)."""
    din = max(Dp, Hp)
    weights = (din * Hp + Hp * Hp + Hp * Op) * itemsize * 2   # (conservatively double-buffered)
    fixed = weights + bb * Hp * 4 + (1 << 20)
    per_t = bb * (2 * din * itemsize                          # x block (double-buffered)
                  + 2 * max(Hp * itemsize, Op * 4)            # out block (double-buffered)
                  + Hp * 4)                                    # pre / h-seq scratch (f32)
    budget = int(vmem_cap * 0.6)
    cap = (budget - fixed) // max(per_t, 1)
    cap = int(max(1, min(cap, 64, T)))
    best = 1
    for c in range(1, cap + 1):
        if T % c == 0:
            best = c
    if best * 2 >= cap:          # a decent exact divisor exists -> no time padding
        return best, T
    return cap, _round_up(T, cap)


# ----------------------------------------------------------------------------
# RNN layer kernel (tb timesteps per grid step).
#   pre  = x_block @ W_ih^T + b          (one big MXU matmul per block)
#   h_t  = tanh(pre_t + h_{t-1} @ W_hh^T)  (serial; only the H x H matmul)
# Grid = (batch_blocks, time_blocks); time is the inner ("arbitrary") axis,
# the hidden state lives in VMEM scratch across time blocks.
# ----------------------------------------------------------------------------
def _rnn_block_kernel(x_ref, wih_ref, whh_ref, b_ref,
                      out_ref, hlast_ref, pre_ref, h_ref,
                      *, tb, t_valid, full_blocks):
    t = pl.program_id(1)

    @pl.when(t == 0)
    def _():
        h_ref[...] = jnp.zeros_like(h_ref)        # init_hidden: zeros

    _, bb, din = x_ref.shape
    hp = whh_ref.shape[0]

    # Block-wide input projection, staged in VMEM scratch (bounds vreg pressure).
    xb = x_ref[...].reshape(tb * bb, din)
    pre_ref[...] = (jnp.dot(xb, wih_ref[...], preferred_element_type=jnp.float32)
                    + b_ref[...]).reshape(tb, bb, hp)

    n_valid = tb if full_blocks else jnp.minimum(tb, t_valid - t * tb)

    def step(i, h):
        h = jnp.tanh(pre_ref[i]
                     + jnp.dot(h.astype(whh_ref.dtype), whh_ref[...],
                               preferred_element_type=jnp.float32))
        out_ref[i] = h.astype(out_ref.dtype)
        return h

    h = lax.fori_loop(0, n_valid, step, h_ref[...])
    h_ref[...] = h

    @pl.when(t == pl.num_programs(1) - 1)
    def _():
        hlast_ref[...] = h.astype(hlast_ref.dtype)


# Last-layer variant: the final Linear is HOISTED out of the per-step loop.
# h_t is stashed back into the `pre` scratch; after the recurrence the whole
# block does one (tb*bb, H) @ (H, O) matmul + bias and stores lane-dense.
def _rnn_block_fc_kernel(x_ref, wih_ref, whh_ref, b_ref, fcw_ref, fcb_ref,
                         out_ref, hlast_ref, pre_ref, h_ref,
                         *, tb, t_valid, full_blocks):
    t = pl.program_id(1)

    @pl.when(t == 0)
    def _():
        h_ref[...] = jnp.zeros_like(h_ref)

    _, bb, din = x_ref.shape
    hp = whh_ref.shape[0]
    op = fcw_ref.shape[1]

    xb = x_ref[...].reshape(tb * bb, din)
    pre_ref[...] = (jnp.dot(xb, wih_ref[...], preferred_element_type=jnp.float32)
                    + b_ref[...]).reshape(tb, bb, hp)

    n_valid = tb if full_blocks else jnp.minimum(tb, t_valid - t * tb)

    def step(i, h):
        h = jnp.tanh(pre_ref[i]
                     + jnp.dot(h.astype(whh_ref.dtype), whh_ref[...],
                               preferred_element_type=jnp.float32))
        pre_ref[i] = h          # reuse scratch: stash h_t for the block FC matmul
        return h

    h = lax.fori_loop(0, n_valid, step, h_ref[...])
    h_ref[...] = h

    # One full-block FC matmul (tail rows of a padded final block are sliced
    # off by the caller and never consumed).
    hseq = pre_ref[...].reshape(tb * bb, hp).astype(fcw_ref.dtype)
    out_ref[...] = (jnp.dot(hseq, fcw_ref[...], preferred_element_type=jnp.float32)
                    + fcb_ref[...]).reshape(tb, bb, op).astype(out_ref.dtype)

    @pl.when(t == pl.num_programs(1) - 1)
    def _():
        hlast_ref[...] = h.astype(hlast_ref.dtype)


# ----------------------------------------------------------------------------
# Layer wrappers (padded, time-major inputs: (Tpad, B_pad, D_pad)).
# ----------------------------------------------------------------------------
def _common_in_specs(tb, bb, dp, hp):
    return [
        pl.BlockSpec((tb, bb, dp), lambda b, t: (t, b, 0)),   # x block
        pl.BlockSpec((dp, hp), lambda b, t: (0, 0)),          # W_ih^T (resident)
        pl.BlockSpec((hp, hp), lambda b, t: (0, 0)),          # W_hh^T (resident)
        pl.BlockSpec((1, hp), lambda b, t: (0, 0)),           # bias
    ]


def rnn_layer(seq, wih_t, whh_t, bias, *, tb, bb, t_valid, vmem_limit):
    Tp, Bp, Dp = seq.shape
    Hp = whh_t.shape[0]
    grid = (Bp // bb, Tp // tb)
    kernel = functools.partial(_rnn_block_kernel, tb=tb, t_valid=t_valid,
                               full_blocks=(Tp == t_valid))
    return pl.pallas_call(
        kernel,
        out_shape=(jax.ShapeDtypeStruct((Tp, Bp, Hp), seq.dtype),
                   jax.ShapeDtypeStruct((Bp, Hp), jnp.float32)),
        grid_spec=pltpu.PrefetchScalarGridSpec(
            num_scalar_prefetch=0,
            grid=grid,
            in_specs=_common_in_specs(tb, bb, Dp, Hp),
            out_specs=[
                pl.BlockSpec((tb, bb, Hp), lambda b, t: (t, b, 0)),   # hidden seq
                pl.BlockSpec((bb, Hp), lambda b, t: (b, 0)),          # last hidden
            ],
            scratch_shapes=[pltpu.VMEM((tb, bb, Hp), jnp.float32),    # pre / h-seq
                            pltpu.VMEM((bb, Hp), jnp.float32)],       # hidden state
        ),
        compiler_params=pltpu.CompilerParams(
            dimension_semantics=("parallel", "arbitrary"),
            vmem_limit_bytes=vmem_limit),
    )(seq, wih_t, whh_t, bias)


def rnn_layer_fused_fc(seq, wih_t, whh_t, bias, fc_w_t, fc_b,
                       *, tb, bb, t_valid, vmem_limit):
    Tp, Bp, Dp = seq.shape
    Hp = whh_t.shape[0]
    Op = fc_w_t.shape[1]
    grid = (Bp // bb, Tp // tb)
    in_specs = _common_in_specs(tb, bb, Dp, Hp) + [
        pl.BlockSpec((Hp, Op), lambda b, t: (0, 0)),          # fc W^T (resident)
        pl.BlockSpec((1, Op), lambda b, t: (0, 0)),           # fc bias
    ]
    kernel = functools.partial(_rnn_block_fc_kernel, tb=tb, t_valid=t_valid,
                               full_blocks=(Tp == t_valid))
    return pl.pallas_call(
        kernel,
        out_shape=(jax.ShapeDtypeStruct((Tp, Bp, Op), jnp.float32),
                   jax.ShapeDtypeStruct((Bp, Hp), jnp.float32)),
        grid_spec=pltpu.PrefetchScalarGridSpec(
            num_scalar_prefetch=0,
            grid=grid,
            in_specs=in_specs,
            out_specs=[
                pl.BlockSpec((tb, bb, Op), lambda b, t: (t, b, 0)),   # fc output seq
                pl.BlockSpec((bb, Hp), lambda b, t: (b, 0)),          # last hidden
            ],
            scratch_shapes=[pltpu.VMEM((tb, bb, Hp), jnp.float32),
                            pltpu.VMEM((bb, Hp), jnp.float32)],
        ),
        compiler_params=pltpu.CompilerParams(
            dimension_semantics=("parallel", "arbitrary"),
            vmem_limit_bytes=vmem_limit),
    )(seq, wih_t, whh_t, bias, fc_w_t, fc_b)


# ----------------------------------------------------------------------------
# Full module forward
# ----------------------------------------------------------------------------
@functools.partial(jax.jit, static_argnames=("n_layers", "compute_dtype"))
def rnn_module_forward(x, params, *, n_layers, compute_dtype=jnp.bfloat16):
    """x: (B, T, input_size) -> (out (B*T, output_size), hidden (n_layers, B, H))."""
    B, T, D = x.shape
    H = params["whh_t_0"].shape[0]
    O = params["fc_w_t"].shape[1]

    itemsize = 2 if compute_dtype == jnp.bfloat16 else 4
    sub = 16 if itemsize == 2 else 8       # bf16 packs two rows per sublane
    Bp = _round_up(B, sub)
    Dp = _round_up(D, 128)
    Hp = _round_up(H, 128)
    Op = _round_up(O, 128)

    n_tc = _num_tensorcores()
    vmem_cap = _vmem_capacity_bytes()
    vmem_limit = int(max(32 * 1024 * 1024,
                         min(vmem_cap * 0.85, 128 * 1024 * 1024)))

    # Split the batch across TensorCores only on 2-TC chips (v7x); on v5e/v6e
    # a split would just serialize two full recurrences.
    bb = Bp
    if n_tc >= 2 and Bp % (2 * sub) == 0:
        bb = Bp // 2

    tb, Tpad = _pick_time_block(T, bb, Dp, Hp, Op, itemsize, vmem_cap)

    # One layout change for the whole module: batch-first -> time-major, padded.
    seq = jnp.transpose(x, (1, 0, 2)).astype(compute_dtype)
    seq = jnp.pad(seq, ((0, Tpad - T), (0, Bp - B), (0, Dp - D)))

    fc_w_t = jnp.pad(params["fc_w_t"], ((0, Hp - H), (0, Op - O))).astype(compute_dtype)
    fc_b = jnp.pad(params["fc_b"], ((0, 0), (0, Op - O))).astype(jnp.float32)

    last_hiddens = []
    for l in range(n_layers):
        d_in = D if l == 0 else H
        dp_in = Dp if l == 0 else Hp
        wih_t = jnp.pad(params[f"wih_t_{l}"],
                        ((0, dp_in - d_in), (0, Hp - H))).astype(compute_dtype)
        whh_t = jnp.pad(params[f"whh_t_{l}"],
                        ((0, Hp - H), (0, Hp - H))).astype(compute_dtype)
        bias = jnp.pad(params[f"bias_{l}"], ((0, 0), (0, Hp - H))).astype(jnp.float32)

        if l == n_layers - 1:
            seq, h_last = rnn_layer_fused_fc(seq, wih_t, whh_t, bias, fc_w_t, fc_b,
                                             tb=tb, bb=bb, t_valid=T,
                                             vmem_limit=vmem_limit)
        else:
            seq, h_last = rnn_layer(seq, wih_t, whh_t, bias,
                                    tb=tb, bb=bb, t_valid=T,
                                    vmem_limit=vmem_limit)
        last_hiddens.append(h_last[:B, :H])

    hidden = jnp.stack(last_hiddens, axis=0)                     # (n_layers, B, H)

    # `seq` is now the fc output, time-major (Tpad, Bp, Op), f32.  Re-order to
    # the PyTorch (B*T, O) row order (cheap, done once).
    out = jnp.transpose(seq, (1, 0, 2))[:B, :T, :O].reshape(B * T, O)
    return out, hidden


# ----------------------------------------------------------------------------
# Deterministic parameter init (PyTorch-style U(-1/sqrt(H), 1/sqrt(H)))
# ----------------------------------------------------------------------------
def init_params(key, input_size, hidden_dim, n_layers, output_size):
    params = {}
    bound = 1.0 / (hidden_dim ** 0.5)
    for l in range(n_layers):
        d_in = input_size if l == 0 else hidden_dim
        key, k1, k2, k3, k4 = jax.random.split(key, 5)
        w_ih = jax.random.uniform(k1, (hidden_dim, d_in), jnp.float32, -bound, bound)
        w_hh = jax.random.uniform(k2, (hidden_dim, hidden_dim), jnp.float32, -bound, bound)
        b_ih = jax.random.uniform(k3, (hidden_dim,), jnp.float32, -bound, bound)
        b_hh = jax.random.uniform(k4, (hidden_dim,), jnp.float32, -bound, bound)
        params[f"wih_t_{l}"] = w_ih.T                       # (d_in, H)
        params[f"whh_t_{l}"] = w_hh.T                       # (H, H)
        params[f"bias_{l}"] = (b_ih + b_hh)[None, :]        # (1, H)
    key, k1, k2 = jax.random.split(key, 3)
    fc_w = jax.random.uniform(k1, (output_size, hidden_dim), jnp.float32, -bound, bound)
    fc_b = jax.random.uniform(k2, (output_size,), jnp.float32, -bound, bound)
    params["fc_w_t"] = fc_w.T                               # (H, O)
    params["fc_b"] = fc_b[None, :]                          # (1, O)
    return params


# ----------------------------------------------------------------------------
# Pure-JAX reference (same math) for correctness checks
# ----------------------------------------------------------------------------
def reference_forward(x, params, n_layers):
    seq = x                                                  # (B, T, D)
    B, T, _ = x.shape
    hiddens = []
    for l in range(n_layers):
        wih_t = params[f"wih_t_{l}"]
        whh_t = params[f"whh_t_{l}"]
        bias = params[f"bias_{l}"]
        H = whh_t.shape[0]
        h = jnp.zeros((B, H), jnp.float32)
        outs = []
        for t in range(T):
            h = jnp.tanh(seq[:, t, :] @ wih_t + h @ whh_t + bias)
            outs.append(h)
        seq = jnp.stack(outs, axis=1)                        # (B, T, H)
        hiddens.append(h)
    hidden = jnp.stack(hiddens, axis=0)
    out_flat = seq.reshape(-1, seq.shape[-1])
    out = out_flat @ params["fc_w_t"] + params["fc_b"]
    return out, hidden


if __name__ == "__main__":
    B, T = 2, 8
    input_size, hidden_dim, n_layers, output_size = 16, 32, 2, 10

    key = jax.random.PRNGKey(0)
    kx, kp = jax.random.split(key)
    x = jax.random.normal(kx, (B, T, input_size), jnp.float32)
    params = init_params(kp, input_size, hidden_dim, n_layers, output_size)

    out_ref, hidden_ref = reference_forward(x, params, n_layers)

    # f32 run: exact-ish match against the reference.
    out, hidden = rnn_module_forward(x, params, n_layers=n_layers,
                                     compute_dtype=jnp.float32)
    out = jax.block_until_ready(out)
    hidden = jax.block_until_ready(hidden)
    assert out.shape == (B * T, output_size)
    assert hidden.shape == (n_layers, B, hidden_dim)
    assert jnp.allclose(out, out_ref, atol=3e-5, rtol=3e-5)
    assert jnp.allclose(hidden, hidden_ref, atol=3e-5, rtol=3e-5)

    # Default bf16 matmul run (f32 accumulation / f32 hidden state): loose tol.
    out_bf, hidden_bf = rnn_module_forward(x, params, n_layers=n_layers)
    out_bf = jax.block_until_ready(out_bf)
    hidden_bf = jax.block_until_ready(hidden_bf)
    assert out_bf.shape == (B * T, output_size)
    assert bool(jnp.all(jnp.isfinite(out_bf)))
    assert float(jnp.max(jnp.abs(out_bf - out_ref))) < 0.25
    assert float(jnp.max(jnp.abs(hidden_bf - hidden_ref))) < 0.25

    print("KERNEL_OK")
</pallas_src>

<mosaic_0001>
module attributes {stable_mosaic.version = 11 : i64} {
  func.func @_rnn_block_kernel(%arg0: i32, %arg1: i32, %arg2: memref<8x8x128xf32, #tpu.memory_space<vmem>>, %arg3: memref<128x128xf32, #tpu.memory_space<vmem>>, %arg4: memref<128x128xf32, #tpu.memory_space<vmem>>, %arg5: memref<1x128xf32, #tpu.memory_space<vmem>>, %arg6: memref<8x8x128xf32, #tpu.memory_space<vmem>>, %arg7: memref<8x128xf32, #tpu.memory_space<vmem>>, %arg8: memref<8x8x128xf32, #tpu.memory_space<vmem>>, %arg9: memref<8x128xf32, #tpu.memory_space<vmem>>) attributes {dimension_semantics = [#tpu.dimension_semantics<parallel>, #tpu.dimension_semantics<arbitrary>], iteration_bounds = array<i64: 1, 1>, scalar_prefetch = 0 : i64, scratch_operands = 2 : i64, tpu.core_type = #tpu.core_type<tc>, window_params = [{transform_indices = @transform_0, window_bounds = array<i64: 8, 8, 128>}, {pipeline_mode = #tpu.pipeline_mode<synchronous>, transform_indices = @transform_1, window_bounds = array<i64: 128, 128>}, {pipeline_mode = #tpu.pipeline_mode<synchronous>, transform_indices = @transform_2, window_bounds = array<i64: 128, 128>}, {pipeline_mode = #tpu.pipeline_mode<synchronous>, transform_indices = @transform_3, window_bounds = array<i64: 1, 128>}, {transform_indices = @transform_4, window_bounds = array<i64: 8, 8, 128>}, {transform_indices = @transform_5, window_bounds = array<i64: 8, 128>}]} {
    %c0_i32 = arith.constant 0 : i32
    %0 = arith.cmpi eq, %arg1, %c0_i32 : i32
    %1 = arith.extui %0 : i1 to i32
    %c0_i32_0 = arith.constant 0 : i32
    %2 = arith.cmpi ne, %1, %c0_i32_0 : i32
    scf.if %2 {
      %cst_18 = arith.constant 0.000000e+00 : f32
      %19 = vector.broadcast %cst_18 : f32 to vector<8x128xf32>
      %c0_19 = arith.constant 0 : index
      %c0_20 = arith.constant 0 : index
      %20 = vector.load %arg9[%c0_19, %c0_20] : memref<8x128xf32, #tpu.memory_space<vmem>>, vector<8x128xf32>
      tpu.vector_store %arg9[%c0_19, %c0_20], %19 {strides = array<i32>} : memref<8x128xf32, #tpu.memory_space<vmem>>, vector<8x128xf32>,
    } else {
    }
    %c0 = arith.constant 0 : index
    %c0_1 = arith.constant 0 : index
    %c0_2 = arith.constant 0 : index
    %3 = vector.load %arg2[%c0, %c0_1, %c0_2] : memref<8x8x128xf32, #tpu.memory_space<vmem>>, vector<8x8x128xf32>
    %4 = vector.shape_cast %3 : vector<8x8x128xf32> to vector<64x128xf32>
    %c0_3 = arith.constant 0 : index
    %c0_4 = arith.constant 0 : index
    %5 = vector.load %arg3[%c0_3, %c0_4] : memref<128x128xf32, #tpu.memory_space<vmem>>, vector<128x128xf32>
    %cst = arith.constant dense<0.000000e+00> : vector<64x128xf32>
    %6 = tpu.matmul %4, %5, %cst {dimension_numbers = #tpu.dot_dimension_numbers<[1], [0], [0], [1], [0, 0, 1, 1], [], []>} : vector<64x128xf32>, vector<128x128xf32>, vector<64x128xf32> -> vector<64x128xf32>
    %c0_5 = arith.constant 0 : index
    %c0_6 = arith.constant 0 : index
    %7 = vector.load %arg5[%c0_5, %c0_6] : memref<1x128xf32, #tpu.memory_space<vmem>>, vector<1x128xf32>
    %8 = vector.broadcast %7 : vector<1x128xf32> to vector<64x128xf32>
    %9 = arith.addf %6, %8 : vector<64x128xf32>
    %10 = vector.shape_cast %9 : vector<64x128xf32> to vector<8x8x128xf32>
    %c0_7 = arith.constant 0 : index
    %c0_8 = arith.constant 0 : index
    %c0_9 = arith.constant 0 : index
    %11 = vector.load %arg8[%c0_7, %c0_8, %c0_9] : memref<8x8x128xf32, #tpu.memory_space<vmem>>, vector<8x8x128xf32>
    tpu.vector_store %arg8[%c0_7, %c0_8, %c0_9], %10 {strides = array<i32>} : memref<8x8x128xf32, #tpu.memory_space<vmem>>, vector<8x8x128xf32>,
    %c0_10 = arith.constant 0 : index
    %c0_11 = arith.constant 0 : index
    %12 = vector.load %arg9[%c0_10, %c0_11] : memref<8x128xf32, #tpu.memory_space<vmem>>, vector<8x128xf32>
    %c0_i32_12 = arith.constant 0 : i32
    %c8_i32 = arith.constant 8 : i32
    %13 = arith.addi %c0_i32_12, %c8_i32 : i32
    %c1_i32 = arith.constant 1 : i32
    %14 = scf.for %arg10 = %c0_i32_12 to %13 step %c1_i32 iter_args(%arg11 = %12) -> (vector<8x128xf32>)  : i32 {
      %19 = arith.index_cast %arg10 : i32 to index
      %c0_18 = arith.constant 0 : index
      %c0_19 = arith.constant 0 : index
      %20 = vector.load %arg8[%19, %c0_18, %c0_19] : memref<8x8x128xf32, #tpu.memory_space<vmem>>, vector<1x8x128xf32>
      %21 = vector.shape_cast %20 : vector<1x8x128xf32> to vector<8x128xf32>
      %c0_20 = arith.constant 0 : index
      %c0_21 = arith.constant 0 : index
      %22 = vector.load %arg4[%c0_20, %c0_21] : memref<128x128xf32, #tpu.memory_space<vmem>>, vector<128x128xf32>
      %cst_22 = arith.constant dense<0.000000e+00> : vector<8x128xf32>
      %23 = tpu.matmul %arg11, %22, %cst_22 {dimension_numbers = #tpu.dot_dimension_numbers<[1], [0], [0], [1], [0, 0, 1, 1], [], []>} : vector<8x128xf32>, vector<128x128xf32>, vector<8x128xf32> -> vector<8x128xf32>
      %24 = arith.addf %21, %23 : vector<8x128xf32>
      %25 = math.tanh %24 : vector<8x128xf32>
      %26 = arith.index_cast %arg10 : i32 to index
      %c0_23 = arith.constant 0 : index
      %c0_24 = arith.constant 0 : index
      %27 = vector.load %arg6[%26, %c0_23, %c0_24] : memref<8x8x128xf32, #tpu.memory_space<vmem>>, vector<1x8x128xf32>
      %28 = vector.shape_cast %27 : vector<1x8x128xf32> to vector<8x128xf32>
      %29 = vector.shape_cast %25 : vector<8x128xf32> to vector<1x8x128xf32>
      tpu.vector_store %arg6[%26, %c0_23, %c0_24], %29 {strides = array<i32>} : memref<8x8x128xf32, #tpu.memory_space<vmem>>, vector<1x8x128xf32>,
      scf.yield %25 : vector<8x128xf32>
    }
    %c8_i32_13 = arith.constant 8 : i32
    %c0_14 = arith.constant 0 : index
    %c0_15 = arith.constant 0 : index
    %15 = vector.load %arg9[%c0_14, %c0_15] : memref<8x128xf32, #tpu.memory_space<vmem>>, vector<8x128xf32>
    tpu.vector_store %arg9[%c0_14, %c0_15], %14 {strides = array<i32>} : memref<8x128xf32, #tpu.memory_space<vmem>>, vector<8x128xf32>,
    %c0_i32_16 = arith.constant 0 : i32
    %16 = arith.cmpi eq, %arg1, %c0_i32_16 : i32
    %17 = arith.extui %16 : i1 to i32
    %c0_i32_17 = arith.constant 0 : i32
    %18 = arith.cmpi ne, %17, %c0_i32_17 : i32
    scf.if %18 {
      %c0_18 = arith.constant 0 : index
      %c0_19 = arith.constant 0 : index
      %19 = vector.load %arg7[%c0_18, %c0_19] : memref<8x128xf32, #tpu.memory_space<vmem>>, vector<8x128xf32>
      tpu.vector_store %arg7[%c0_18, %c0_19], %14 {strides = array<i32>} : memref<8x128xf32, #tpu.memory_space<vmem>>, vector<8x128xf32>,
    } else {
    }
    return
  }
  func.func @transform_0(%arg0: i32, %arg1: i32) -> (i32, i32, i32) {
    %c0_i32 = arith.constant 0 : i32
    %c0_i32_0 = arith.constant 0 : i32
    return %arg1, %arg0, %c0_i32 : i32, i32, i32
  }
  func.func @transform_1(%arg0: i32, %arg1: i32) -> (i32, i32) {
    %c0_i32 = arith.constant 0 : i32
    %c0_i32_0 = arith.constant 0 : i32
    %c0_i32_1 = arith.constant 0 : i32
    return %c0_i32, %c0_i32_0 : i32, i32
  }
  func.func @transform_2(%arg0: i32, %arg1: i32) -> (i32, i32) {
    %c0_i32 = arith.constant 0 : i32
    %c0_i32_0 = arith.constant 0 : i32
    %c0_i32_1 = arith.constant 0 : i32
    return %c0_i32, %c0_i32_0 : i32, i32
  }
  func.func @transform_3(%arg0: i32, %arg1: i32) -> (i32, i32) {
    %c0_i32 = arith.constant 0 : i32
    %c0_i32_0 = arith.constant 0 : i32
    %c0_i32_1 = arith.constant 0 : i32
    return %c0_i32, %c0_i32_0 : i32, i32
  }
  func.func @transform_4(%arg0: i32, %arg1: i32) -> (i32, i32, i32) {
    %c0_i32 = arith.constant 0 : i32
    %c0_i32_0 = arith.constant 0 : i32
    return %arg1, %arg0, %c0_i32 : i32, i32, i32
  }
  func.func @transform_5(%arg0: i32, %arg1: i32) -> (i32, i32) {
    %c0_i32 = arith.constant 0 : i32
    %c0_i32_0 = arith.constant 0 : i32
    return %arg0, %c0_i32 : i32, i32
  }
}

module attributes {stable_mosaic.version = 11 : i64} {
  func.func @_rnn_block_fc_kernel(%arg0: i32, %arg1: i32, %arg2: memref<8x8x128xf32, #tpu.memory_space<vmem>>, %arg3: memref<128x128xf32, #tpu.memory_space<vmem>>, %arg4: memref<128x128xf32, #tpu.memory_space<vmem>>, %arg5: memref<1x128xf32, #tpu.memory_space<vmem>>, %arg6: memref<128x128xf32, #tpu.memory_space<vmem>>, %arg7: memref<1x128xf32, #tpu.memory_space<vmem>>, %arg8: memref<8x8x128xf32, #tpu.memory_space<vmem>>, %arg9: memref<8x128xf32, #tpu.memory_space<vmem>>, %arg10: memref<8x8x128xf32, #tpu.memory_space<vmem>>, %arg11: memref<8x128xf32, #tpu.memory_space<vmem>>) attributes {dimension_semantics = [#tpu.dimension_semantics<parallel>, #tpu.dimension_semantics<arbitrary>], iteration_bounds = array<i64: 1, 1>, scalar_prefetch = 0 : i64, scratch_operands = 2 : i64, tpu.core_type = #tpu.core_type<tc>, window_params = [{transform_indices = @transform_0, window_bounds = array<i64: 8, 8, 128>}, {pipeline_mode = #tpu.pipeline_mode<synchronous>, transform_indices = @transform_1, window_bounds = array<i64: 128, 128>}, {pipeline_mode = #tpu.pipeline_mode<synchronous>, transform_indices = @transform_2, window_bounds = array<i64: 128, 128>}, {pipeline_mode = #tpu.pipeline_mode<synchronous>, transform_indices = @transform_3, window_bounds = array<i64: 1, 128>}, {pipeline_mode = #tpu.pipeline_mode<synchronous>, transform_indices = @transform_4, window_bounds = array<i64: 128, 128>}, {pipeline_mode = #tpu.pipeline_mode<synchronous>, transform_indices = @transform_5, window_bounds = array<i64: 1, 128>}, {transform_indices = @transform_6, window_bounds = array<i64: 8, 8, 128>}, {transform_indices = @transform_7, window_bounds = array<i64: 8, 128>}]} {
    %c0_i32 = arith.constant 0 : i32
    %0 = arith.cmpi eq, %arg1, %c0_i32 : i32
    %1 = arith.extui %0 : i1 to i32
    %c0_i32_0 = arith.constant 0 : i32
    %2 = arith.cmpi ne, %1, %c0_i32_0 : i32
    scf.if %2 {
      %cst_29 = arith.constant 0.000000e+00 : f32
      %28 = vector.broadcast %cst_29 : f32 to vector<8x128xf32>
      %c0_30 = arith.constant 0 : index
      %c0_31 = arith.constant 0 : index
      %29 = vector.load %arg11[%c0_30, %c0_31] : memref<8x128xf32, #tpu.memory_space<vmem>>, vector<8x128xf32>
      tpu.vector_store %arg11[%c0_30, %c0_31], %28 {strides = array<i32>} : memref<8x128xf32, #tpu.memory_space<vmem>>, vector<8x128xf32>,
    } else {
    }
    %c0 = arith.constant 0 : index
    %c0_1 = arith.constant 0 : index
    %c0_2 = arith.constant 0 : index
    %3 = vector.load %arg2[%c0, %c0_1, %c0_2] : memref<8x8x128xf32, #tpu.memory_space<vmem>>, vector<8x8x128xf32>
    %4 = vector.shape_cast %3 : vector<8x8x128xf32> to vector<64x128xf32>
    %c0_3 = arith.constant 0 : index
    %c0_4 = arith.constant 0 : index
    %5 = vector.load %arg3[%c0_3, %c0_4] : memref<128x128xf32, #tpu.memory_space<vmem>>, vector<128x128xf32>
    %cst = arith.constant dense<0.000000e+00> : vector<64x128xf32>
    %6 = tpu.matmul %4, %5, %cst {dimension_numbers = #tpu.dot_dimension_numbers<[1], [0], [0], [1], [0, 0, 1, 1], [], []>} : vector<64x128xf32>, vector<128x128xf32>, vector<64x128xf32> -> vector<64x128xf32>
    %c0_5 = arith.constant 0 : index
    %c0_6 = arith.constant 0 : index
    %7 = vector.load %arg5[%c0_5, %c0_6] : memref<1x128xf32, #tpu.memory_space<vmem>>, vector<1x128xf32>
    %8 = vector.broadcast %7 : vector<1x128xf32> to vector<64x128xf32>
    %9 = arith.addf %6, %8 : vector<64x128xf32>
    %10 = vector.shape_cast %9 : vector<64x128xf32> to vector<8x8x128xf32>
    %c0_7 = arith.constant 0 : index
    %c0_8 = arith.constant 0 : index
    %c0_9 = arith.constant 0 : index
    %11 = vector.load %arg10[%c0_7, %c0_8, %c0_9] : memref<8x8x128xf32, #tpu.memory_space<vmem>>, vector<8x8x128xf32>
    tpu.vector_store %arg10[%c0_7, %c0_8, %c0_9], %10 {strides = array<i32>} : memref<8x8x128xf32, #tpu.memory_space<vmem>>, vector<8x8x128xf32>,
    %c0_10 = arith.constant 0 : index
    %c0_11 = arith.constant 0 : index
    %12 = vector.load %arg11[%c0_10, %c0_11] : memref<8x128xf32, #tpu.memory_space<vmem>>, vector<8x128xf32>
    %c0_i32_12 = arith.constant 0 : i32
    %c8_i32 = arith.constant 8 : i32
    %13 = arith.addi %c0_i32_12, %c8_i32 : i32
    %c1_i32 = arith.constant 1 : i32
    %14 = scf.for %arg12 = %c0_i32_12 to %13 step %c1_i32 iter_args(%arg13 = %12) -> (vector<8x128xf32>)  : i32 {
      %28 = arith.index_cast %arg12 : i32 to index
      %c0_29 = arith.constant 0 : index
      %c0_30 = arith.constant 0 : index
      %29 = vector.load %arg10[%28, %c0_29, %c0_30] : memref<8x8x128xf32, #tpu.memory_space<vmem>>, vector<1x8x128xf32>
      %30 = vector.shape_cast %29 : vector<1x8x128xf32> to vector<8x128xf32>
      %c0_31 = arith.constant 0 : index
      %c0_32 = arith.constant 0 : index
      %31 = vector.load %arg4[%c0_31, %c0_32] : memref<128x128xf32, #tpu.memory_space<vmem>>, vector<128x128xf32>
      %cst_33 = arith.constant dense<0.000000e+00> : vector<8x128xf32>
      %32 = tpu.matmul %arg13, %31, %cst_33 {dimension_numbers = #tpu.dot_dimension_numbers<[1], [0], [0], [1], [0, 0, 1, 1], [], []>} : vector<8x128xf32>, vector<128x128xf32>, vector<8x128xf32> -> vector<8x128xf32>
      %33 = arith.addf %30, %32 : vector<8x128xf32>
      %34 = math.tanh %33 : vector<8x128xf32>
      %35 = arith.index_cast %arg12 : i32 to index
      %c0_34 = arith.constant 0 : index
      %c0_35 = arith.constant 0 : index
      %36 = vector.load %arg10[%35, %c0_34, %c0_35] : memref<8x8x128xf32, #tpu.memory_space<vmem>>, vector<1x8x128xf32>
      %37 = vector.shape_cast %36 : vector<1x8x128xf32> to vector<8x128xf32>
      %38 = vector.shape_cast %34 : vector<8x128xf32> to vector<1x8x128xf32>
      tpu.vector_store %arg10[%35, %c0_34, %c0_35], %38 {strides = array<i32>} : memref<8x8x128xf32, #tpu.memory_space<vmem>>, vector<1x8x128xf32>,
      scf.yield %34 : vector<8x128xf32>
    }
    %c8_i32_13 = arith.constant 8 : i32
    %c0_14 = arith.constant 0 : index
    %c0_15 = arith.constant 0 : index
    %15 = vector.load %arg11[%c0_14, %c0_15] : memref<8x128xf32, #tpu.memory_space<vmem>>, vector<8x128xf32>
    tpu.vector_store %arg11[%c0_14, %c0_15], %14 {strides = array<i32>} : memref<8x128xf32, #tpu.memory_space<vmem>>, vector<8x128xf32>,
    %c0_16 = arith.constant 0 : index
    %c0_17 = arith.constant 0 : index
    %c0_18 = arith.constant 0 : index
    %16 = vector.load %arg10[%c0_16, %c0_17, %c0_18] : memref<8x8x128xf32, #tpu.memory_space<vmem>>, vector<8x8x128xf32>
    %17 = vector.shape_cast %16 : vector<8x8x128xf32> to vector<64x128xf32>
    %c0_19 = arith.constant 0 : index
    %c0_20 = arith.constant 0 : index
    %18 = vector.load %arg6[%c0_19, %c0_20] : memref<128x128xf32, #tpu.memory_space<vmem>>, vector<128x128xf32>
    %cst_21 = arith.constant dense<0.000000e+00> : vector<64x128xf32>
    %19 = tpu.matmul %17, %18, %cst_21 {dimension_numbers = #tpu.dot_dimension_numbers<[1], [0], [0], [1], [0, 0, 1, 1], [], []>} : vector<64x128xf32>, vector<128x128xf32>, vector<64x128xf32> -> vector<64x128xf32>
    %c0_22 = arith.constant 0 : index
    %c0_23 = arith.constant 0 : index
    %20 = vector.load %arg7[%c0_22, %c0_23] : memref<1x128xf32, #tpu.memory_space<vmem>>, vector<1x128xf32>
    %21 = vector.broadcast %20 : vector<1x128xf32> to vector<64x128xf32>
    %22 = arith.addf %19, %21 : vector<64x128xf32>
    %23 = vector.shape_cast %22 : vector<64x128xf32> to vector<8x8x128xf32>
    %c0_24 = arith.constant 0 : index
    %c0_25 = arith.constant 0 : index
    %c0_26 = arith.constant 0 : index
    %24 = vector.load %arg8[%c0_24, %c0_25, %c0_26] : memref<8x8x128xf32, #tpu.memory_space<vmem>>, vector<8x8x128xf32>
    tpu.vector_store %arg8[%c0_24, %c0_25, %c0_26], %23 {strides = array<i32>} : memref<8x8x128xf32, #tpu.memory_space<vmem>>, vector<8x8x128xf32>,
    %c0_i32_27 = arith.constant 0 : i32
    %25 = arith.cmpi eq, %arg1, %c0_i32_27 : i32
    %26 = arith.extui %25 : i1 to i32
    %c0_i32_28 = arith.constant 0 : i32
    %27 = arith.cmpi ne, %26, %c0_i32_28 : i32
    scf.if %27 {
      %c0_29 = arith.constant 0 : index
      %c0_30 = arith.constant 0 : index
      %28 = vector.load %arg9[%c0_29, %c0_30] : memref<8x128xf32, #tpu.memory_space<vmem>>, vector<8x128xf32>
      tpu.vector_store %arg9[%c0_29, %c0_30], %14 {strides = array<i32>} : memref<8x128xf32, #tpu.memory_space<vmem>>, vector<8x128xf32>,
    } else {
    }
    return
  }
  func.func @transform_0(%arg0: i32, %arg1: i32) -> (i32, i32, i32) {
    %c0_i32 = arith.constant 0 : i32
    %c0_i32_0 = arith.constant 0 : i32
    return %arg1, %arg0, %c0_i32 : i32, i32, i32
  }
  func.func @transform_1(%arg0: i32, %arg1: i32) -> (i32, i32) {
    %c0_i32 = arith.constant 0 : i32
    %c0_i32_0 = arith.constant 0 : i32
    %c0_i32_1 = arith.constant 0 : i32
    return %c0_i32, %c0_i32_0 : i32, i32
  }
  func.func @transform_2(%arg0: i32, %arg1: i32) -> (i32, i32) {
    %c0_i32 = arith.constant 0 : i32
    %c0_i32_0 = arith.constant 0 : i32
    %c0_i32_1 = arith.constant 0 : i32
    return %c0_i32, %c0_i32_0 : i32, i32
  }
  func.func @transform_3(%arg0: i32, %arg1: i32) -> (i32, i32) {
    %c0_i32 = arith.constant 0 : i32
    %c0_i32_0 = arith.constant 0 : i32
    %c0_i32_1 = arith.constant 0 : i32
    return %c0_i32, %c0_i32_0 : i32, i32
  }
  func.func @transform_4(%arg0: i32, %arg1: i32) -> (i32, i32) {
    %c0_i32 = arith.constant 0 : i32
    %c0_i32_0 = arith.constant 0 : i32
    %c0_i32_1 = arith.constant 0 : i32
    return %c0_i32, %c0_i32_0 : i32, i32
  }
  func.func @transform_5(%arg0: i32, %arg1: i32) -> (i32, i32) {
    %c0_i32 = arith.constant 0 : i32
    %c0_i32_0 = arith.constant 0 : i32
    %c0_i32_1 = arith.constant 0 : i32
    return %c0_i32, %c0_i32_0 : i32, i32
  }
  func.func @transform_6(%arg0: i32, %arg1: i32) -> (i32, i32, i32) {
    %c0_i32 = arith.constant 0 : i32
    %c0_i32_0 = arith.constant 0 : i32
    return %arg1, %arg0, %c0_i32 : i32, i32, i32
  }
  func.func @transform_7(%arg0: i32, %arg1: i32) -> (i32, i32) {
    %c0_i32 = arith.constant 0 : i32
    %c0_i32_0 = arith.constant 0 : i32
    return %arg0, %c0_i32 : i32, i32
  }
}

</mosaic_0001>

<bundles_post_ra>
// kernel: rnn_module_forward.3
= control target key start
LH: loop header
LB: loop body
LE: loop exit
PB: predicated region body
PF: predicated region fallthrough
CT: control target
= control target key end

     0   :  { %13 = vsyncpa [#allocation5], 0  ;;  %s1287_s0 = inlined_call_operand.hbm [shape: f32[8,8,128], index: 0, kind: input, shape index: {}]   ;;  %s1288_s1 = inlined_call_operand.hbm [shape: f32[128,128], index: 1, kind: input, shape index: {}]   ;;  %s1289_s2 = inlined_call_operand.hbm [shape: f32[128,128], index: 2, kind: input, shape index: {}]   ;;  %s1290_s3 = inlined_call_operand.hbm [shape: f32[1,128], index: 3, kind: input, shape index: {}]   ;;  %s1291_s4 = inlined_call_operand.hbm [shape: f32[128,128], index: 4, kind: input, shape index: {}]   ;;  %s1292_s5 = inlined_call_operand.hbm [shape: f32[1,128], index: 5, kind: input, shape index: {}]   ;;  %s1293_s6 = inlined_call_operand.hbm [shape: f32[8,8,128], index: 6, kind: output, shape index: {0}]   ;;  %s1294_s7 = inlined_call_operand.hbm [shape: f32[8,128], index: 7, kind: output, shape index: {1}]  }
   0x1   :  { %14 = vsyncpa [#allocation8], 0 }
   0x2   :  { %15 = vsyncpa [#allocation11], 0 }
   0x3   :  { %16 = vsyncpa [#allocation14], 0 }
   0x4   :  { %17 = vsyncpa [#allocation6], 0 }
   0x5   :  { %18 = vsyncpa [#allocation17], 0  ;;  %s1094_s24 = smov [#allocation7]   ;;  %s1095_s26 = smov [#allocation10]  }
   0x6   :  { %s36_s25 = sshll.u32 %s1094_s24, 4  ;;  %s61_s27 = sshll.u32 %s1095_s26, 4  ;;  %s37_s25 = int_to_ptr.vmem [resolvable:$true] %s36_s25  ;;  %s1147_s27 = int_to_ptr.vmem [resolvable:$true] %s61_s27 }
   0x7   :  { %s890_s30 = scalar_lea.hbm %s1288_s1, 2048 }
   0x8   :  { %p891_p0 = scmp.ne.s32.totalorder %s1288_s1, %s890_s30  ;;  %p894_p1 = scmp.lt.u32.totalorder %s890_s30, %s1288_s1 }
   0xa   :  { %p896_p2 = pnand %p894_p1, %p891_p0 }
   0xc   :  { %899 = shalt.err (!%p896_p2)
}
   0xd   :  { %s900_s12 = scalar_lea.vmem %s37_s25, 2048  ;;  %p905_p4 = scmp.lt.s32.totalorder %s37_s25, %s37_s25 }
   0xe   :  { %p901_p3 = scmp.ne.s32.totalorder %s37_s25, %s900_s12  ;;  %p906_p5 = scmp.lt.s32.totalorder %s900_s12, %s900_s12 }
  0x10   :  { %p907_p6 = por %p906_p5, %p905_p4 }
  0x12   :  { %p908_p7 = pnand %p907_p6, %p901_p3 }
  0x14   :  { %911 = shalt.err (!%p908_p7)
}
  0x15   :  { %s1096_s13 = smov 128   ;;  %s1097_s14 = smov 8  }
  0x16   :  { %42 = dma.hbm_to_vmem [thread:$0]  %s1288_s1, 2048, %s37_s25, [#allocation8], %s1096_s13, %s1096_s13, %s1097_s14  }
  0x17   :  { %s912_s19 = scalar_lea.hbm %s1290_s3, 16 }
  0x18   :  { %p913_p8 = scmp.ne.s32.totalorder %s1290_s3, %s912_s19  ;;  %p916_p9 = scmp.lt.u32.totalorder %s912_s19, %s1290_s3 }
  0x1a   :  { %p918_p10 = pnand %p916_p9, %p913_p8 }
  0x1c   :  { %921 = shalt.err (!%p918_p10)
}
  0x1d   :  { %s922_s24 = scalar_lea.vmem %s1147_s27, 16  ;;  %s926_s1 = scalar_lea.vmem %s1147_s27, 32 }
  0x1e   :  { %p923_p11 = scmp.ne.s32.totalorder %s1147_s27, %s922_s24  ;;  %p927_p12 = scmp.lt.s32.totalorder %s1147_s27, %s1147_s27 }
  0x1f   :  { %p928_p13 = scmp.lt.s32.totalorder %s926_s1, %s922_s24 }
  0x21   :  { %p929_p0 = por %p928_p13, %p927_p12 }
  0x23   :  { %p930_p1 = pnand %p929_p0, %p923_p11 }
  0x25   :  { %933 = shalt.err (!%p930_p1)
}
  0x26   :  { %64 = dma.hbm_to_vmem [thread:$0]  %s1290_s3, 16, %s1147_s27, [#allocation11]  }
  0x27   :  { %s1098_s28 = smov [#allocation4]   ;;  %s1099_s30 = smov [#allocation9]  }
  0x28   :  { %s24_s29 = sshll.u32 %s1098_s28, 4  ;;  %s48_s8 = sshll.u32 %s1099_s30, 4  ;;  %s25_s29 = int_to_ptr.vmem [resolvable:$true] %s24_s29  ;;  %s1182_s8 = int_to_ptr.vmem [resolvable:$true] %s48_s8 }
  0x29   :  { %s934_s11 = scalar_lea.hbm %s1287_s0, 1024 }
  0x2a   :  { %p935_p2 = scmp.ne.s32.totalorder %s1287_s0, %s934_s11  ;;  %p938_p3 = scmp.lt.u32.totalorder %s934_s11, %s1287_s0 }
  0x2c   :  { %p940_p4 = pnand %p938_p3, %p935_p2 }
  0x2e   :  { %943 = shalt.err (!%p940_p4)
}
  0x2f   :  { %s944_s3 = scalar_lea.vmem %s25_s29, 1024  ;;  %p949_p6 = scmp.lt.s32.totalorder %s25_s29, %s25_s29 }
  0x30   :  { %p945_p5 = scmp.ne.s32.totalorder %s25_s29, %s944_s3  ;;  %p950_p7 = scmp.lt.s32.totalorder %s944_s3, %s944_s3 }
  0x32   :  { %p951_p8 = por %p950_p7, %p949_p6 }
  0x34   :  { %p952_p9 = pnand %p951_p8, %p945_p5 }
  0x36   :  { %955 = shalt.err (!%p952_p9)
}
  0x37   :  { %30 = dma.hbm_to_vmem [thread:$0]  %s1287_s0, 1024, %s25_s29, [#allocation5], %s1096_s13, %s1096_s13, %s1097_s14  }
  0x38   :  { %s956_s21 = scalar_lea.hbm %s1289_s2, 2048 }
  0x39   :  { %p957_p10 = scmp.ne.s32.totalorder %s1289_s2, %s956_s21  ;;  %p960_p11 = scmp.lt.u32.totalorder %s956_s21, %s1289_s2 }
  0x3b   :  { %p962_p12 = pnand %p960_p11, %p957_p10 }
  0x3d   :  { %965 = shalt.err (!%p962_p12)
}
  0x3e   :  { %s966_s25 = scalar_lea.vmem %s1182_s8, 2048  ;;  %p971_p0 = scmp.lt.s32.totalorder %s1182_s8, %s1182_s8 }
  0x3f   :  { %p967_p13 = scmp.ne.s32.totalorder %s1182_s8, %s966_s25  ;;  %p972_p1 = scmp.lt.s32.totalorder %s966_s25, %s966_s25 }
  0x41   :  { %p973_p2 = por %p972_p1, %p971_p0 }
  0x43   :  { %p974_p3 = pnand %p973_p2, %p967_p13 }
  0x45   :  { %977 = shalt.err (!%p974_p3)
}
  0x46   :  { %54 = dma.hbm_to_vmem [thread:$0]  %s1289_s2, 2048, %s1182_s8, [#allocation8], %s1096_s13, %s1096_s13, %s1097_s14  }
  0x47   :  { %s1100_s28 = smov [#allocation12]   ;;  %s1101_s30 = smov [#allocation13]  }
  0x48   :  { %s70_s29 = sshll.u32 %s1100_s28, 4  ;;  %s83_s9 = sshll.u32 %s1101_s30, 4  ;;  %s71_s29 = int_to_ptr.vmem [resolvable:$true] %s70_s29  ;;  %s84_s9 = int_to_ptr.vmem [resolvable:$true] %s83_s9 }
  0x49   :  { %s978_s12 = scalar_lea.hbm %s1291_s4, 2048 }
  0x4a   :  { %p979_p4 = scmp.ne.s32.totalorder %s1291_s4, %s978_s12  ;;  %p982_p5 = scmp.lt.u32.totalorder %s978_s12, %s1291_s4 }
  0x4c   :  { %p984_p6 = pnand %p982_p5, %p979_p4 }
  0x4e   :  { %987 = shalt.err (!%p984_p6)
}
  0x4f   :  { %s988_s2 = scalar_lea.vmem %s71_s29, 2048  ;;  %p993_p8 = scmp.lt.s32.totalorder %s71_s29, %s71_s29 }
  0x50   :  { %p989_p7 = scmp.ne.s32.totalorder %s71_s29, %s988_s2  ;;  %p994_p9 = scmp.lt.s32.totalorder %s988_s2, %s988_s2 }
  0x52   :  { %p995_p10 = por %p994_p9, %p993_p8 }
  0x54   :  { %p996_p11 = pnand %p995_p10, %p989_p7 }
  0x56   :  { %999 = shalt.err (!%p996_p11)
}
  0x57   :  { %76 = dma.hbm_to_vmem [thread:$0]  %s1291_s4, 2048, %s71_s29, [#allocation11], %s1096_s13, %s1096_s13, %s1097_s14  }
  0x58   :  { %s1000_s20 = scalar_lea.hbm %s1292_s5, 16 }
  0x59   :  { %p1001_p12 = scmp.ne.s32.totalorder %s1292_s5, %s1000_s20  ;;  %p1004_p13 = scmp.lt.u32.totalorder %s1000_s20, %s1292_s5 }
  0x5b   :  { %p1006_p0 = pnand %p1004_p13, %p1001_p12 }
  0x5d   :  { %1009 = shalt.err (!%p1006_p0)
}
  0x5e   :  { %s1010_s1 = scalar_lea.vmem %s84_s9, 16  ;;  %s1014_s25 = scalar_lea.vmem %s84_s9, 32 }
  0x5f   :  { %p1011_p1 = scmp.ne.s32.totalorder %s84_s9, %s1010_s1  ;;  %p1015_p2 = scmp.lt.s32.totalorder %s84_s9, %s84_s9 }
  0x60   :  { %p1016_p3 = scmp.lt.s32.totalorder %s1014_s25, %s1010_s1 }
  0x62   :  { %p1017_p4 = por %p1016_p3, %p1015_p2 }
  0x64   :  { %p1018_p5 = pnand %p1017_p4, %p1011_p1 }
  0x66   :  { %1021 = shalt.err (!%p1018_p5)
}
  0x67   :  { %86 = dma.hbm_to_vmem [thread:$0]  %s1292_s5, 16, %s84_s9, [#allocation14]  }
  0x68   :  { %1074 = dma.done.wait [#allocation5], 1024  }
  0x69   :  { %1075 = vsyncadd [#allocation5], 4294966272 }
  0x6a   :  { %1076 = dma.done.wait [#allocation8], 4096  }
  0x6b   :  { %1077 = vsyncadd [#allocation8], 4294963200 }
  0x6c   :  { %1078 = dma.done.wait [#allocation11], 2064  }
  0x6d   :  { %1079 = vsyncadd [#allocation11], 4294965232 }
  0x6e   :  { %1080 = dma.done.wait [#allocation14], 16  }
  0x6f   :  { %1081 = vsyncadd [#allocation14], 4294967280  ;;  %v118_v0 = vld [vmem:[#allocation7] sm:$0xff]  ;;  %v119_v1 = vld [vmem:[#allocation7 + $0x8] sm:$0xff]  ;;  %v1246_v49 = vmov 0.0   ;;  %s1248_s5 = smov 0  }
  0x70   :  { %v120_v2 = vld [vmem:[#allocation7 + $0x10] sm:$0xff]  ;;  %v738_v3 = vpack.c.bf16 %v119_v1, %v118_v0  ;;  %v121_v4 = vld [vmem:[#allocation7 + $0x18] sm:$0xff]  ;;  %v122_v6 = vld [vmem:[#allocation7 + $0x20] sm:$0xff] }
  0x71   :  { %v742_v5 = vpack.c.bf16 %v121_v4, %v120_v2  ;;  %v123_v7 = vld [vmem:[#allocation7 + $0x28] sm:$0xff]  ;;  %v110_v9 = vld [vmem:[#allocation4] sm:$0xff]  ;;  %v124_v11 = vld [vmem:[#allocation7 + $0x30] sm:$0xff] }
  0x72   :  { %739 = vmatprep.subr.bf16.mxu0 %v738_v3  ;;  %826 = vmatprep.subr.bf16.mxu1 %v738_v3  ;;  %v746_v8 = vpack.c.bf16 %v123_v7, %v122_v6  ;;  %v114_v10 = vld [vmem:[#allocation4 + $0x20] sm:$0xff]  ;;  %v125_v12 = vld [vmem:[#allocation7 + $0x38] sm:$0xff]  ;;  %v127_v15 = vld [vmem:[#allocation7 + $0x48] sm:$0xff] }
  0x73   :  { %741 = vmatpush3.bf16.msra.mxu0 %v738_v3  ;;  %834 = vmatpush3.bf16.msra.mxu1 %v738_v3  ;;  %v750_v13 = vpack.c.bf16 %v125_v12, %v124_v11  ;;  %v126_v14 = vld [vmem:[#allocation7 + $0x40] sm:$0xff]  ;;  %v128_v17 = vld [vmem:[#allocation7 + $0x50] sm:$0xff]  ;;  %v129_v18 = vld [vmem:[#allocation7 + $0x58] sm:$0xff] }
  0x74   :  { %743 = vmatprep.subr.bf16.mxu0 %v742_v5  ;;  %827 = vmatprep.subr.bf16.mxu1 %v742_v5  ;;  %v754_v16 = vpack.c.bf16 %v127_v15, %v126_v14  ;;  %v758_v19 = vpack.c.bf16 %v129_v18, %v128_v17  ;;  %v130_v20 = vld [vmem:[#allocation7 + $0x60] sm:$0xff]  ;;  %v131_v21 = vld [vmem:[#allocation7 + $0x68] sm:$0xff]  ;;  %v132_v23 = vld [vmem:[#allocation7 + $0x70] sm:$0xff] }
  0x75   :  { %647 = vmatprep.mubr.f32.mxu0 %v110_v9  ;;  %653 = vmatprep.mubr.f32.mxu1 %v114_v10  ;;  %v762_v22 = vpack.c.bf16 %v131_v21, %v130_v20  ;;  %v133_v24 = vld [vmem:[#allocation7 + $0x78] sm:$0xff]  ;;  %v111_v26 = vld [vmem:[#allocation4 + $0x8] sm:$0xff]  ;;  %v112_v28 = vld [vmem:[#allocation4 + $0x10] sm:$0xff] }
  0x76   :  { %v766_v25 = vpack.c.bf16 %v133_v24, %v132_v23  ;;  %v115_v27 = vld [vmem:[#allocation4 + $0x28] sm:$0xff]  ;;  %v116_v29 = vld [vmem:[#allocation4 + $0x30] sm:$0xff]  ;;  %v113_v30 = vld [vmem:[#allocation4 + $0x18] sm:$0xff] }
  0x77   :  { %745 = vmatpush3.bf16.msra.mxu0 %v742_v5  ;;  %835 = vmatpush3.bf16.msra.mxu1 %v742_v5  ;;  %v117_v31 = vld [vmem:[#allocation4 + $0x38] sm:$0xff]  ;;  %v547_v32 = vld [vmem:[#allocation10] ss:$0 sm:$0xff] }
  0x78   :  { %747 = vmatprep.subr.bf16.mxu0 %v746_v8  ;;  %828 = vmatprep.subr.bf16.mxu1 %v746_v8 }
  0x7b   :  { %749 = vmatpush3.bf16.msra.mxu0 %v746_v8  ;;  %836 = vmatpush3.bf16.msra.mxu1 %v746_v8 }
  0x7c   :  { %751 = vmatprep.subr.bf16.mxu0 %v750_v13  ;;  %829 = vmatprep.subr.bf16.mxu1 %v750_v13 }
  0x7f   :  { %753 = vmatpush3.bf16.msra.mxu0 %v750_v13  ;;  %837 = vmatpush3.bf16.msra.mxu1 %v750_v13 }
  0x80   :  { %755 = vmatprep.subr.bf16.mxu0 %v754_v16  ;;  %830 = vmatprep.subr.bf16.mxu1 %v754_v16 }
  0x83   :  { %757 = vmatpush3.bf16.msra.mxu0 %v754_v16  ;;  %838 = vmatpush3.bf16.msra.mxu1 %v754_v16 }
  0x84   :  { %759 = vmatprep.subr.bf16.mxu0 %v758_v19  ;;  %831 = vmatprep.subr.bf16.mxu1 %v758_v19 }
  0x87   :  { %761 = vmatpush3.bf16.msra.mxu0 %v758_v19  ;;  %839 = vmatpush3.bf16.msra.mxu1 %v758_v19 }
  0x88   :  { %763 = vmatprep.subr.bf16.mxu0 %v762_v22  ;;  %832 = vmatprep.subr.bf16.mxu1 %v762_v22 }
  0x8b   :  { %765 = vmatpush3.bf16.msra.mxu0 %v762_v22  ;;  %840 = vmatpush3.bf16.msra.mxu1 %v762_v22 }
  0x8c   :  { %767 = vmatprep.subr.bf16.mxu0 %v766_v25  ;;  %833 = vmatprep.subr.bf16.mxu1 %v766_v25 }
  0x8f   :  { %769 = vmatpush3.bf16.msra.mxu0 %v766_v25  ;;  %841 = vmatpush3.bf16.msra.mxu1 %v766_v25 }
  0x92   :  { %648 = vmatmul.mubr.f32.vlgmr.msra.gmra.mrb[0].mxu0 %v111_v26  ;;  %654 = vmatmul.mubr.f32.vlgmr.msra.gmra.mrb[0].mxu1 %v115_v27 }
  0x93   :  { %650 = vmatprep.mubr.f32.mxu0 %v112_v28  ;;  %656 = vmatprep.mubr.f32.mxu1 %v116_v29 }
  0x96   :  { %651 = vmatmul.mubr.f32.gmra.mrb[2].mxu0 %v113_v30  ;;  %657 = vmatmul.mubr.f32.gmra.mrb[2].mxu1 %v117_v31 }
 0x165   :  { %v649_v33 = vpop.f32.mrb[0].mxu0  ;;  %v655_v34 = vpop.f32.mrb[0].mxu1 }
 0x166   :  { %v213_v35 = vadd.f32 %v649_v33, %v547_v32  ;;  %v233_v36 = vadd.f32 %v655_v34, %v547_v32  ;;  %v207_v37 = vpop.f32.mrb[1].mxu0  ;;  %v227_v38 = vpop.f32.mrb[1].mxu1 }
 0x167   :  { %v208_v39 = vadd.f32 %v547_v32, %v207_v37  ;;  %v228_v40 = vadd.f32 %v547_v32, %v227_v38 }
 0x168   :  { %247 = vst [vmem:[#allocation2 + $0x8] sm:$0xff] %v213_v35  ;;  %251 = vst [vmem:[#allocation2 + $0x28] sm:$0xff] %v233_v36 }
 0x169   :  { %246 = vst [vmem:[#allocation2] sm:$0xff] %v208_v39  ;;  %250 = vst [vmem:[#allocation2 + $0x20] sm:$0xff] %v228_v40  ;;  %v652_v41 = vpop.f32.mrb[2].mxu0  ;;  %v658_v42 = vpop.f32.mrb[2].mxu1 }
 0x16a   :  { %v223_v43 = vadd.f32 %v652_v41, %v547_v32  ;;  %v243_v44 = vadd.f32 %v658_v42, %v547_v32  ;;  %v217_v45 = vpop.f32.mrb[3].mxu0  ;;  %v237_v46 = vpop.f32.mrb[3].mxu1 }
 0x16b   :  { %v218_v47 = vadd.f32 %v547_v32, %v217_v45  ;;  %v238_v48 = vadd.f32 %v547_v32, %v237_v46 }
 0x16c   :  { %249 = vst [vmem:[#allocation2 + $0x18] sm:$0xff] %v223_v43  ;;  %253 = vst [vmem:[#allocation2 + $0x38] sm:$0xff] %v243_v44 }
 0x16d   :  { %248 = vst [vmem:[#allocation2 + $0x10] sm:$0xff] %v218_v47  ;;  %252 = vst [vmem:[#allocation2 + $0x30] sm:$0xff] %v238_v48 }
 0x16e LB: > { %v265_v50 = vld [vmem:[#allocation9] sm:$0xff]  ;;  %v266_v51 = vld [vmem:[#allocation9 + $0x8] sm:$0xff]  ;;  %v267_v52 = vld [vmem:[#allocation9 + $0x10] sm:$0xff]  ;;  %v1102_v53 = vmov 0.0|0.0   ;;  %vm1103_vm0 = vmmov 0   ;;  %v1104_v56 = vmov 0.0   ;;  %s1092_s5 = sphi %s1248_s5, %s260_s5   ;;  %v1088_v49 = vphi %v1246_v49, %v1295_v49  }
 0x16f   : > { %770 = vmatprep.subr.bf16.mxu0 %v1102_v53  ;;  %v771_v54 = vpack.c.bf16 %v266_v51, %v265_v50  ;;  %v268_v55 = vld [vmem:[#allocation9 + $0x18] sm:$0xff]  ;;  %691 = vmatprep.mubr.msk.f32.mxu0 %vm1103_vm0, %v1104_v56  ;;  %v269_v58 = vld [vmem:[#allocation9 + $0x20] sm:$0xff]  ;;  %v270_v59 = vld [vmem:[#allocation9 + $0x28] sm:$0xff]  ;;  %s548_s26 = sshll.u32 %s1092_s5, 3  ;;  %s260_s5 = sadd.s32 1, %s1092_s5  }
 0x170   : > { %v774_v57 = vpack.c.bf16 %v268_v55, %v267_v52  ;;  %v777_v60 = vpack.c.bf16 %v270_v59, %v269_v58  ;;  %v271_v61 = vld [vmem:[#allocation9 + $0x30] sm:$0xff]  ;;  %v272_v62 = vld [vmem:[#allocation9 + $0x38] sm:$0xff]  ;;  %v273_v0 = vld [vmem:[#allocation9 + $0x40] sm:$0xff]  ;;  %s263_s28 = scalar_lea.vmem [#allocation2], %s548_s26  ;;  %p257_p6 = scmp.ge.s32.totalorder %s260_s5, 8  }
 0x171   : > { %772 = vmatpush3.bf16.msra.mxu0 %v771_v54  ;;  %v780_v63 = vpack.c.bf16 %v272_v62, %v271_v61  ;;  %v274_v1 = vld [vmem:[#allocation9 + $0x48] sm:$0xff]  ;;  %v275_v3 = vld [vmem:[#allocation9 + $0x50] sm:$0xff]  ;;  %v276_v4 = vld [vmem:[#allocation9 + $0x58] sm:$0xff]  ;;  %s1105_s29 = smov (%p257_p6), [#allocation16]  }
 0x172   : > { %773 = vmatprep.subr.bf16.mxu0 %v1102_v53  ;;  %v783_v2 = vpack.c.bf16 %v274_v1, %v273_v0  ;;  %v786_v5 = vpack.c.bf16 %v276_v4, %v275_v3  ;;  %v277_v6 = vld [vmem:[#allocation9 + $0x60] sm:$0xff]  ;;  %v278_v7 = vld [vmem:[#allocation9 + $0x68] sm:$0xff]  ;;  %v279_v9 = vld [vmem:[#allocation9 + $0x70] sm:$0xff]  ;;  %s521_s30 = sshll.u32 (%p257_p6), %s1105_s29, 4  ;;  %s522_s30 = int_to_ptr.vmem [resolvable:$true] %s521_s30 }
 0x173   : > { %v789_v8 = vpack.c.bf16 %v278_v7, %v277_v6  ;;  %v280_v10 = vld [vmem:[#allocation9 + $0x78] sm:$0xff]  ;;  %v363_v17 = vld [vmem:[#allocation12] sm:$0xff] (%p257_p6)  ;;  %v364_v18 = vld [vmem:[#allocation12 + $0x8] sm:$0xff] (%p257_p6)  ;;  %s1022_s9 = scalar_lea.vmem (%p257_p6), %s522_s30, 128  ;;  %p1027_p8 = scmp.lt.s32.totalorder (%p257_p6), %s522_s30, %s522_s30 }
 0x174   : > { %v792_v11 = vpack.c.bf16 %v280_v10, %v279_v9  ;;  %v264_v12 = vld [vmem:[%s263_s28] sm:$0xff]  ;;  %v365_v19 = vld [vmem:[#allocation12 + $0x10] sm:$0xff] (%p257_p6)  ;;  %v794_v20 = vpack.c.bf16 (%p257_p6), %v364_v18, %v363_v17  ;;  %v368_v24 = vld [vmem:[#allocation12 + $0x28] sm:$0xff] (%p257_p6)  ;;  %p1023_p7 = scmp.ne.s32.totalorder (%p257_p6), %s522_s30, %s1022_s9  ;;  %p1028_p9 = scmp.lt.s32.totalorder (%p257_p6), %s1022_s9, %s1022_s9 }
 0x175   : > { %775 = vmatpush3.bf16.msra.mxu0 %v774_v57  ;;  %v366_v21 = vld [vmem:[#allocation12 + $0x18] sm:$0xff] (%p257_p6)  ;;  %v367_v23 = vld [vmem:[#allocation12 + $0x20] sm:$0xff] (%p257_p6)  ;;  %v369_v28 = vld [vmem:[#allocation12 + $0x30] sm:$0xff] (%p257_p6) }
 0x176   : > { %776 = vmatprep.subr.bf16.mxu0 %v1102_v53  ;;  %v798_v22 = vpack.c.bf16 (%p257_p6), %v366_v21, %v365_v19  ;;  %842 = vmatprep.subr.bf16.mxu1 (%p257_p6), %v794_v20  ;;  %v802_v25 = vpack.c.bf16 (%p257_p6), %v368_v24, %v367_v23  ;;  %v370_v29 = vld [vmem:[#allocation12 + $0x38] sm:$0xff] (%p257_p6)  ;;  %v371_v31 = vld [vmem:[#allocation12 + $0x40] sm:$0xff] (%p257_p6)  ;;  %v372_v32 = vld [vmem:[#allocation12 + $0x48] sm:$0xff] (%p257_p6)  ;;  %p1029_p10 = por (%p257_p6), %p1028_p9, %p1027_p8 }
 0x177   :  { %850 = vmatpush3.bf16.msra.mxu1 (%p257_p6), %v794_v20  ;;  %v806_v30 = vpack.c.bf16 (%p257_p6), %v370_v29, %v369_v28  ;;  %v810_v33 = vpack.c.bf16 (%p257_p6), %v372_v32, %v371_v31  ;;  %v373_v34 = vld [vmem:[#allocation12 + $0x50] sm:$0xff] (%p257_p6)  ;;  %v374_v35 = vld [vmem:[#allocation12 + $0x58] sm:$0xff] (%p257_p6)  ;;  %v375_v37 = vld [vmem:[#allocation12 + $0x60] sm:$0xff] (%p257_p6) }
 0x178   :  { %843 = vmatprep.subr.bf16.mxu1 (%p257_p6), %v798_v22  ;;  %v814_v36 = vpack.c.bf16 (%p257_p6), %v374_v35, %v373_v34  ;;  %v376_v38 = vld [vmem:[#allocation12 + $0x68] sm:$0xff] (%p257_p6)  ;;  %v377_v40 = vld [vmem:[#allocation12 + $0x70] sm:$0xff] (%p257_p6)  ;;  %v378_v41 = vld [vmem:[#allocation12 + $0x78] sm:$0xff] (%p257_p6)  ;;  %p1030_p11 = pnand (%p257_p6), %p1029_p10, %p1023_p7 }
 0x179   : > { %778 = vmatpush3.bf16.msra.mxu0 %v777_v60  ;;  %v818_v39 = vpack.c.bf16 (%p257_p6), %v376_v38, %v375_v37  ;;  %v822_v42 = vpack.c.bf16 (%p257_p6), %v378_v41, %v377_v40 }
 0x17a   : > { %779 = vmatprep.subr.bf16.mxu0 %v1102_v53 }
 0x17b   :  { %851 = vmatpush3.bf16.msra.mxu1 (%p257_p6), %v798_v22 }
 0x17c   :  { %844 = vmatprep.subr.bf16.mxu1 (%p257_p6), %v802_v25 }
 0x17d   : > { %781 = vmatpush3.bf16.msra.mxu0 %v780_v63 }
 0x17e   : > { %782 = vmatprep.subr.bf16.mxu0 %v1102_v53 }
 0x17f   :  { %852 = vmatpush3.bf16.msra.mxu1 (%p257_p6), %v802_v25 }
 0x180   :  { %845 = vmatprep.subr.bf16.mxu1 (%p257_p6), %v806_v30 }
 0x181   : > { %784 = vmatpush3.bf16.msra.mxu0 %v783_v2 }
 0x182   : > { %785 = vmatprep.subr.bf16.mxu0 %v1102_v53 }
 0x183   :  { %853 = vmatpush3.bf16.msra.mxu1 (%p257_p6), %v806_v30 }
 0x184   :  { %846 = vmatprep.subr.bf16.mxu1 (%p257_p6), %v810_v33 }
 0x185   : > { %787 = vmatpush3.bf16.msra.mxu0 %v786_v5 }
 0x186   : > { %788 = vmatprep.subr.bf16.mxu0 %v1102_v53 }
 0x187   :  { %854 = vmatpush3.bf16.msra.mxu1 (%p257_p6), %v810_v33 }
 0x188   :  { %847 = vmatprep.subr.bf16.mxu1 (%p257_p6), %v814_v36 }
 0x189   : > { %790 = vmatpush3.bf16.msra.mxu0 %v789_v8 }
 0x18a   : > { %791 = vmatprep.subr.bf16.mxu0 %v1102_v53 }
 0x18b   :  { %855 = vmatpush3.bf16.msra.mxu1 (%p257_p6), %v814_v36 }
 0x18c   :  { %848 = vmatprep.subr.bf16.mxu1 (%p257_p6), %v818_v39 }
 0x18d   : > { %793 = vmatpush3.bf16.msra.mxu0 %v792_v11 }
 0x18e   :  { %795 = vmatprep.subr.bf16.mxu0 (%p257_p6), %v794_v20 }
 0x18f   :  { %856 = vmatpush3.bf16.msra.mxu1 (%p257_p6), %v818_v39 }
 0x190   : > { %692 = vmatmul.mubr.f32.vlgmr.msra.gmra.mrb[0].mxu0 %v1088_v49  ;;  %849 = vmatprep.subr.bf16.mxu1 (%p257_p6), %v822_v42 }
 0x191   :  { %797 = vmatpush3.bf16.msra.mxu0 (%p257_p6), %v794_v20 }
 0x192   :  { %799 = vmatprep.subr.bf16.mxu0 (%p257_p6), %v798_v22 }
 0x193   :  { %857 = vmatpush3.bf16.msra.mxu1 (%p257_p6), %v822_v42 }
 0x195   :  { %801 = vmatpush3.bf16.msra.mxu0 (%p257_p6), %v798_v22 }
 0x196   :  { %803 = vmatprep.subr.bf16.mxu0 (%p257_p6), %v802_v25 }
 0x199   :  { %805 = vmatpush3.bf16.msra.mxu0 (%p257_p6), %v802_v25 }
 0x19a   :  { %807 = vmatprep.subr.bf16.mxu0 (%p257_p6), %v806_v30 }
 0x19d   :  { %809 = vmatpush3.bf16.msra.mxu0 (%p257_p6), %v806_v30 }
 0x19e   :  { %811 = vmatprep.subr.bf16.mxu0 (%p257_p6), %v810_v33 }
 0x1a1   :  { %813 = vmatpush3.bf16.msra.mxu0 (%p257_p6), %v810_v33 }
 0x1a2   :  { %815 = vmatprep.subr.bf16.mxu0 (%p257_p6), %v814_v36 }
 0x1a5   :  { %817 = vmatpush3.bf16.msra.mxu0 (%p257_p6), %v814_v36 }
 0x1a6   :  { %819 = vmatprep.subr.bf16.mxu0 (%p257_p6), %v818_v39 }
 0x1a9   :  { %821 = vmatpush3.bf16.msra.mxu0 (%p257_p6), %v818_v39 }
 0x1aa   :  { %823 = vmatprep.subr.bf16.mxu0 (%p257_p6), %v822_v42 }
 0x1ad   :  { %825 = vmatpush3.bf16.msra.mxu0 (%p257_p6), %v822_v42 }
 0x263   : > { %v347_v13 = vpop.f32.mrb[0].mxu0 }
 0x264   : > { %v351_v14 = vadd.f32 %v347_v13, %v264_v12  ;;  %v693_v15 = vpop.f32.mrb[1].mxu0 }
 0x266   : > { %888 = vtanh.f32 %v351_v14 }
 0x26b   :  { %259 = sbr.rel (!%p257_p6) target bundleno = 366 (0x16e), region = 92 }
 0x270   : > { %v889_v16 = vpop.eup %888  }
 0x271   : > { %353 = vst [vmem:[%s263_s28] sm:$0xff] %v889_v16  ;;  %v1295_v49 = vmov %v889_v16  ;;  %502 = vst [vmem:[#allocation16] sm:$0xff] (%p257_p6), %v889_v16 }
 0x278   :  { %v355_v26 = vld [vmem:[#allocation2] sm:$0xff]  ;;  %v356_v43 = vld [vmem:[#allocation2 + $0x8] sm:$0xff]  ;;  %v357_v45 = vld [vmem:[#allocation2 + $0x10] sm:$0xff] }
 0x279   :  { %v359_v27 = vld [vmem:[#allocation2 + $0x20] sm:$0xff]  ;;  %726 = vmatprep.mubr.f32.mxu0 %v355_v26  ;;  %v360_v44 = vld [vmem:[#allocation2 + $0x28] sm:$0xff]  ;;  %v361_v46 = vld [vmem:[#allocation2 + $0x30] sm:$0xff] }
 0x27a   :  { %732 = vmatprep.mubr.f32.mxu1 %v359_v27  ;;  %727 = vmatmul.mubr.f32.vlgmr.msra.gmra.mrb[0].mxu0 %v356_v43  ;;  %v358_v47 = vld [vmem:[#allocation2 + $0x18] sm:$0xff] }
 0x27b   :  { %733 = vmatmul.mubr.f32.vlgmr.msra.gmra.mrb[0].mxu1 %v360_v44  ;;  %729 = vmatprep.mubr.f32.mxu0 %v357_v45  ;;  %v362_v48 = vld [vmem:[#allocation2 + $0x38] sm:$0xff] }
 0x27c   :  { %735 = vmatprep.mubr.f32.mxu1 %v361_v46 }
 0x27e   :  { %730 = vmatmul.mubr.f32.gmra.mrb[2].mxu0 %v358_v47 }
 0x27f   :  { %736 = vmatmul.mubr.f32.gmra.mrb[2].mxu1 %v362_v48 }
 0x280   :  { %1033 = shalt.err (!%p1030_p11)
}
 0x281   :  { %s1034_s12 = scalar_lea.hbm %s1294_s7, 128 }
 0x282   :  { %p1035_p12 = scmp.ne.s32.totalorder %s1294_s7, %s1034_s12  ;;  %p1038_p13 = scmp.lt.u32.totalorder %s1034_s12, %s1294_s7 }
 0x284   :  { %p1040_p0 = pnand %p1038_p13, %p1035_p12 }
 0x286   :  { %1043 = shalt.err (!%p1040_p0)
}
 0x287   :  { %524 = dma.vmem_to_hbm [thread:$0]  %s522_s30, 128, %s1294_s7, [#allocation17]   ;;  %v549_v49 = vld [vmem:[#allocation13] ss:$0 sm:$0xff] }
 0x288   :  { %s1106_s27 = smov [#allocation15]  }
 0x289   :  { %s508_s18 = sshll.u32 %s1106_s27, 4  ;;  %s509_s18 = int_to_ptr.vmem [resolvable:$true] %s508_s18 }
 0x28a   :  { %s1044_s7 = scalar_lea.vmem %s509_s18, 1024  ;;  %p1049_p2 = scmp.lt.s32.totalorder %s509_s18, %s509_s18 }
 0x28b   :  { %p1045_p1 = scmp.ne.s32.totalorder %s509_s18, %s1044_s7  ;;  %p1050_p3 = scmp.lt.s32.totalorder %s1044_s7, %s1044_s7 }
 0x28d   :  { %p1051_p4 = por %p1050_p3, %p1049_p2 }
 0x28f   :  { %p1052_p5 = pnand %p1051_p4, %p1045_p1 }
 0x34d   :  { %v728_v50 = vpop.f32.mrb[0].mxu0 }
 0x34e   :  { %v734_v51 = vpop.f32.mrb[0].mxu1  ;;  %v458_v52 = vadd.f32 %v728_v50, %v549_v49  ;;  %v452_v54 = vpop.f32.mrb[1].mxu0 }
 0x34f   :  { %v478_v53 = vadd.f32 %v734_v51, %v549_v49  ;;  %v472_v55 = vpop.f32.mrb[1].mxu1  ;;  %v453_v56 = vadd.f32 %v549_v49, %v452_v54 }
 0x350   :  { %v473_v57 = vadd.f32 %v549_v49, %v472_v55  ;;  %492 = vst [vmem:[#allocation15 + $0x8] sm:$0xff] %v458_v52 }
 0x351   :  { %496 = vst [vmem:[#allocation15 + $0x28] sm:$0xff] %v478_v53  ;;  %491 = vst [vmem:[#allocation15] sm:$0xff] %v453_v56  ;;  %v731_v58 = vpop.f32.mrb[2].mxu0 }
 0x352   :  { %495 = vst [vmem:[#allocation15 + $0x20] sm:$0xff] %v473_v57  ;;  %v737_v59 = vpop.f32.mrb[2].mxu1  ;;  %v468_v60 = vadd.f32 %v731_v58, %v549_v49  ;;  %v462_v62 = vpop.f32.mrb[3].mxu0 }
 0x353   :  { %v488_v61 = vadd.f32 %v737_v59, %v549_v49  ;;  %v482_v63 = vpop.f32.mrb[3].mxu1  ;;  %v463_v0 = vadd.f32 %v549_v49, %v462_v62 }
 0x354   :  { %v483_v1 = vadd.f32 %v549_v49, %v482_v63  ;;  %494 = vst [vmem:[#allocation15 + $0x18] sm:$0xff] %v468_v60 }
 0x355   :  { %498 = vst [vmem:[#allocation15 + $0x38] sm:$0xff] %v488_v61  ;;  %493 = vst [vmem:[#allocation15 + $0x10] sm:$0xff] %v463_v0 }
 0x356   :  { %497 = vst [vmem:[#allocation15 + $0x30] sm:$0xff] %v483_v1 }
 0x357   :  { %1055 = shalt.err (!%p1052_p5)
}
 0x358   :  { %s1056_s21 = scalar_lea.hbm %s1293_s6, 1024 }
 0x359   :  { %p1057_p6 = scmp.ne.s32.totalorder %s1293_s6, %s1056_s21  ;;  %p1060_p7 = scmp.lt.u32.totalorder %s1056_s21, %s1293_s6 }
 0x35b   :  { %p1062_p8 = pnand %p1060_p7, %p1057_p6 }
 0x35d   :  { %1065 = shalt.err (!%p1062_p8)
}
 0x35e   :  { %514 = dma.vmem_to_hbm [thread:$0]  %s509_s18, 1024, %s1293_s6, [#allocation6], %s1096_s13, %s1096_s13, %s1097_s14  }
 0x35f   :  { %1082 = dma.done.wait [#allocation6], 1024  }
 0x360   :  { %1083 = vsyncadd [#allocation6], 4294966272 }
 0x361   :  { %1084 = dma.done.wait [#allocation17], 128  }
 0x362   :  { %1085 = vsyncadd [#allocation17], 4294967168 }
 0x363   :  { %531 = vsyncpa [#allocation5], 1 }
 0x364   :  { %532 = vsyncpa [#allocation8], 1 }
 0x365   :  { %533 = vsyncpa [#allocation11], 1 }
 0x366   :  { %534 = vsyncpa [#allocation14], 1 }
 0x367   :  { %535 = vsyncpa [#allocation6], 1 }
 0x368   :  { %536 = vsyncpa [#allocation17], 1 }

// kernel: rnn_module_forward.2
= control target key start
LH: loop header
LB: loop body
LE: loop exit
PB: predicated region body
PF: predicated region fallthrough
CT: control target
= control target key end

     0   :  { %11 = vsyncpa [#allocation5], 0  ;;  %s902_s0 = inlined_call_operand.hbm [shape: f32[8,8,128], index: 0, kind: input, shape index: {}]   ;;  %s903_s1 = inlined_call_operand.hbm [shape: f32[128,128], index: 1, kind: input, shape index: {}]   ;;  %s904_s2 = inlined_call_operand.hbm [shape: f32[128,128], index: 2, kind: input, shape index: {}]   ;;  %s905_s3 = inlined_call_operand.hbm [shape: f32[1,128], index: 3, kind: input, shape index: {}]   ;;  %s906_s4 = inlined_call_operand.hbm [shape: f32[8,8,128], index: 4, kind: output, shape index: {0}]   ;;  %s907_s5 = inlined_call_operand.hbm [shape: f32[8,128], index: 5, kind: output, shape index: {1}]  }
   0x1   :  { %12 = vsyncpa [#allocation8], 0 }
   0x2   :  { %13 = vsyncpa [#allocation11], 0 }
   0x3   :  { %14 = vsyncpa [#allocation6], 0 }
   0x4   :  { %15 = vsyncpa [#allocation14], 0  ;;  %s756_s18 = smov [#allocation7]   ;;  %s757_s20 = smov [#allocation4]  }
   0x5   :  { %s33_s19 = sshll.u32 %s756_s18, 4  ;;  %s21_s21 = sshll.u32 %s757_s20, 4  ;;  %s34_s19 = int_to_ptr.vmem [resolvable:$true] %s33_s19  ;;  %s797_s21 = int_to_ptr.vmem [resolvable:$true] %s21_s21 }
   0x6   :  { %s598_s24 = scalar_lea.hbm %s903_s1, 2048 }
   0x7   :  { %p599_p0 = scmp.ne.s32.totalorder %s903_s1, %s598_s24  ;;  %p602_p1 = scmp.lt.u32.totalorder %s598_s24, %s903_s1 }
   0x9   :  { %p604_p2 = pnand %p602_p1, %p599_p0 }
   0xb   :  { %607 = shalt.err (!%p604_p2)
}
   0xc   :  { %s608_s29 = scalar_lea.vmem %s34_s19, 2048  ;;  %p613_p4 = scmp.lt.s32.totalorder %s34_s19, %s34_s19 }
   0xd   :  { %p609_p3 = scmp.ne.s32.totalorder %s34_s19, %s608_s29  ;;  %p614_p5 = scmp.lt.s32.totalorder %s608_s29, %s608_s29 }
   0xf   :  { %p615_p6 = por %p614_p5, %p613_p4 }
  0x11   :  { %p616_p7 = pnand %p615_p6, %p609_p3 }
  0x13   :  { %619 = shalt.err (!%p616_p7)
}
  0x14   :  { %s758_s30 = smov 128   ;;  %s759_s6 = smov 8  }
  0x15   :  { %39 = dma.hbm_to_vmem [thread:$0]  %s903_s1, 2048, %s34_s19, [#allocation8], %s758_s30, %s758_s30, %s759_s6  }
  0x16   :  { %s620_s11 = scalar_lea.hbm %s902_s0, 1024 }
  0x17   :  { %p621_p8 = scmp.ne.s32.totalorder %s902_s0, %s620_s11  ;;  %p624_p9 = scmp.lt.u32.totalorder %s620_s11, %s902_s0 }
  0x19   :  { %p626_p10 = pnand %p624_p9, %p621_p8 }
  0x1b   :  { %629 = shalt.err (!%p626_p10)
}
  0x1c   :  { %s630_s16 = scalar_lea.vmem %s797_s21, 1024  ;;  %p635_p12 = scmp.lt.s32.totalorder %s797_s21, %s797_s21 }
  0x1d   :  { %p631_p11 = scmp.ne.s32.totalorder %s797_s21, %s630_s16  ;;  %p636_p13 = scmp.lt.s32.totalorder %s630_s16, %s630_s16 }
  0x1f   :  { %p637_p0 = por %p636_p13, %p635_p12 }
  0x21   :  { %p638_p1 = pnand %p637_p0, %p631_p11 }
  0x23   :  { %641 = shalt.err (!%p638_p1)
}
  0x24   :  { %27 = dma.hbm_to_vmem [thread:$0]  %s902_s0, 1024, %s797_s21, [#allocation5], %s758_s30, %s758_s30, %s759_s6  }
  0x25   :  { %s760_s18 = smov [#allocation9]   ;;  %s761_s20 = smov [#allocation10]  }
  0x26   :  { %s45_s19 = sshll.u32 %s760_s18, 4  ;;  %s58_s22 = sshll.u32 %s761_s20, 4  ;;  %s46_s19 = int_to_ptr.vmem [resolvable:$true] %s45_s19  ;;  %s59_s22 = int_to_ptr.vmem [resolvable:$true] %s58_s22 }
  0x27   :  { %s642_s25 = scalar_lea.hbm %s904_s2, 2048 }
  0x28   :  { %p643_p2 = scmp.ne.s32.totalorder %s904_s2, %s642_s25  ;;  %p646_p3 = scmp.lt.u32.totalorder %s642_s25, %s904_s2 }
  0x2a   :  { %p648_p4 = pnand %p646_p3, %p643_p2 }
  0x2c   :  { %651 = shalt.err (!%p648_p4)
}
  0x2d   :  { %s652_s0 = scalar_lea.vmem %s46_s19, 2048  ;;  %p657_p6 = scmp.lt.s32.totalorder %s46_s19, %s46_s19 }
  0x2e   :  { %p653_p5 = scmp.ne.s32.totalorder %s46_s19, %s652_s0  ;;  %p658_p7 = scmp.lt.s32.totalorder %s652_s0, %s652_s0 }
  0x30   :  { %p659_p8 = por %p658_p7, %p657_p6 }
  0x32   :  { %p660_p9 = pnand %p659_p8, %p653_p5 }
  0x34   :  { %663 = shalt.err (!%p660_p9)
}
  0x35   :  { %51 = dma.hbm_to_vmem [thread:$0]  %s904_s2, 2048, %s46_s19, [#allocation8], %s758_s30, %s758_s30, %s759_s6  }
  0x36   :  { %s664_s10 = scalar_lea.hbm %s905_s3, 16 }
  0x37   :  { %p665_p10 = scmp.ne.s32.totalorder %s905_s3, %s664_s10  ;;  %p668_p11 = scmp.lt.u32.totalorder %s664_s10, %s905_s3 }
  0x39   :  { %p670_p12 = pnand %p668_p11, %p665_p10 }
  0x3b   :  { %673 = shalt.err (!%p670_p12)
}
  0x3c   :  { %s674_s15 = scalar_lea.vmem %s59_s22, 16  ;;  %s678_s16 = scalar_lea.vmem %s59_s22, 32 }
  0x3d   :  { %p675_p13 = scmp.ne.s32.totalorder %s59_s22, %s674_s15  ;;  %p679_p0 = scmp.lt.s32.totalorder %s59_s22, %s59_s22 }
  0x3e   :  { %p680_p1 = scmp.lt.s32.totalorder %s678_s16, %s674_s15 }
  0x40   :  { %p681_p2 = por %p680_p1, %p679_p0 }
  0x42   :  { %p682_p3 = pnand %p681_p2, %p675_p13 }
  0x44   :  { %685 = shalt.err (!%p682_p3)
}
  0x45   :  { %61 = dma.hbm_to_vmem [thread:$0]  %s905_s3, 16, %s59_s22, [#allocation11]  }
  0x46   :  { %738 = dma.done.wait [#allocation5], 1024  }
  0x47   :  { %739 = vsyncadd [#allocation5], 4294966272 }
  0x48   :  { %740 = dma.done.wait [#allocation8], 4096  }
  0x49   :  { %741 = vsyncadd [#allocation8], 4294963200 }
  0x4a   :  { %742 = dma.done.wait [#allocation11], 16  }
  0x4b   :  { %743 = vsyncadd [#allocation11], 4294967280  ;;  %v87_v0 = vld [vmem:[#allocation7] sm:$0xff]  ;;  %v88_v1 = vld [vmem:[#allocation7 + $0x8] sm:$0xff]  ;;  %v861_v49 = vmov 0.0   ;;  %s863_s3 = smov 0  }
  0x4c   :  { %v89_v2 = vld [vmem:[#allocation7 + $0x10] sm:$0xff]  ;;  %v496_v3 = vpack.c.bf16 %v88_v1, %v87_v0  ;;  %v90_v4 = vld [vmem:[#allocation7 + $0x18] sm:$0xff]  ;;  %v91_v6 = vld [vmem:[#allocation7 + $0x20] sm:$0xff] }
  0x4d   :  { %v500_v5 = vpack.c.bf16 %v90_v4, %v89_v2  ;;  %v92_v7 = vld [vmem:[#allocation7 + $0x28] sm:$0xff]  ;;  %v79_v9 = vld [vmem:[#allocation4] sm:$0xff]  ;;  %v93_v11 = vld [vmem:[#allocation7 + $0x30] sm:$0xff] }
  0x4e   :  { %497 = vmatprep.subr.bf16.mxu0 %v496_v3  ;;  %552 = vmatprep.subr.bf16.mxu1 %v496_v3  ;;  %v504_v8 = vpack.c.bf16 %v92_v7, %v91_v6  ;;  %v83_v10 = vld [vmem:[#allocation4 + $0x20] sm:$0xff]  ;;  %v94_v12 = vld [vmem:[#allocation7 + $0x38] sm:$0xff]  ;;  %v96_v15 = vld [vmem:[#allocation7 + $0x48] sm:$0xff] }
  0x4f   :  { %499 = vmatpush3.bf16.msra.mxu0 %v496_v3  ;;  %560 = vmatpush3.bf16.msra.mxu1 %v496_v3  ;;  %v508_v13 = vpack.c.bf16 %v94_v12, %v93_v11  ;;  %v95_v14 = vld [vmem:[#allocation7 + $0x40] sm:$0xff]  ;;  %v97_v17 = vld [vmem:[#allocation7 + $0x50] sm:$0xff]  ;;  %v98_v18 = vld [vmem:[#allocation7 + $0x58] sm:$0xff] }
  0x50   :  { %501 = vmatprep.subr.bf16.mxu0 %v500_v5  ;;  %553 = vmatprep.subr.bf16.mxu1 %v500_v5  ;;  %v512_v16 = vpack.c.bf16 %v96_v15, %v95_v14  ;;  %v516_v19 = vpack.c.bf16 %v98_v18, %v97_v17  ;;  %v99_v20 = vld [vmem:[#allocation7 + $0x60] sm:$0xff]  ;;  %v100_v21 = vld [vmem:[#allocation7 + $0x68] sm:$0xff]  ;;  %v101_v23 = vld [vmem:[#allocation7 + $0x70] sm:$0xff] }
  0x51   :  { %449 = vmatprep.mubr.f32.mxu0 %v79_v9  ;;  %455 = vmatprep.mubr.f32.mxu1 %v83_v10  ;;  %v520_v22 = vpack.c.bf16 %v100_v21, %v99_v20  ;;  %v102_v24 = vld [vmem:[#allocation7 + $0x78] sm:$0xff]  ;;  %v80_v26 = vld [vmem:[#allocation4 + $0x8] sm:$0xff]  ;;  %v81_v28 = vld [vmem:[#allocation4 + $0x10] sm:$0xff] }
  0x52   :  { %v524_v25 = vpack.c.bf16 %v102_v24, %v101_v23  ;;  %v84_v27 = vld [vmem:[#allocation4 + $0x28] sm:$0xff]  ;;  %v85_v29 = vld [vmem:[#allocation4 + $0x30] sm:$0xff]  ;;  %v82_v30 = vld [vmem:[#allocation4 + $0x18] sm:$0xff] }
  0x53   :  { %503 = vmatpush3.bf16.msra.mxu0 %v500_v5  ;;  %561 = vmatpush3.bf16.msra.mxu1 %v500_v5  ;;  %v86_v31 = vld [vmem:[#allocation4 + $0x38] sm:$0xff]  ;;  %v374_v32 = vld [vmem:[#allocation10] ss:$0 sm:$0xff] }
  0x54   :  { %505 = vmatprep.subr.bf16.mxu0 %v504_v8  ;;  %554 = vmatprep.subr.bf16.mxu1 %v504_v8 }
  0x57   :  { %507 = vmatpush3.bf16.msra.mxu0 %v504_v8  ;;  %562 = vmatpush3.bf16.msra.mxu1 %v504_v8 }
  0x58   :  { %509 = vmatprep.subr.bf16.mxu0 %v508_v13  ;;  %555 = vmatprep.subr.bf16.mxu1 %v508_v13 }
  0x5b   :  { %511 = vmatpush3.bf16.msra.mxu0 %v508_v13  ;;  %563 = vmatpush3.bf16.msra.mxu1 %v508_v13 }
  0x5c   :  { %513 = vmatprep.subr.bf16.mxu0 %v512_v16  ;;  %556 = vmatprep.subr.bf16.mxu1 %v512_v16 }
  0x5f   :  { %515 = vmatpush3.bf16.msra.mxu0 %v512_v16  ;;  %564 = vmatpush3.bf16.msra.mxu1 %v512_v16 }
  0x60   :  { %517 = vmatprep.subr.bf16.mxu0 %v516_v19  ;;  %557 = vmatprep.subr.bf16.mxu1 %v516_v19 }
  0x63   :  { %519 = vmatpush3.bf16.msra.mxu0 %v516_v19  ;;  %565 = vmatpush3.bf16.msra.mxu1 %v516_v19 }
  0x64   :  { %521 = vmatprep.subr.bf16.mxu0 %v520_v22  ;;  %558 = vmatprep.subr.bf16.mxu1 %v520_v22 }
  0x67   :  { %523 = vmatpush3.bf16.msra.mxu0 %v520_v22  ;;  %566 = vmatpush3.bf16.msra.mxu1 %v520_v22 }
  0x68   :  { %525 = vmatprep.subr.bf16.mxu0 %v524_v25  ;;  %559 = vmatprep.subr.bf16.mxu1 %v524_v25 }
  0x6b   :  { %527 = vmatpush3.bf16.msra.mxu0 %v524_v25  ;;  %567 = vmatpush3.bf16.msra.mxu1 %v524_v25 }
  0x6e   :  { %450 = vmatmul.mubr.f32.vlgmr.msra.gmra.mrb[0].mxu0 %v80_v26  ;;  %456 = vmatmul.mubr.f32.vlgmr.msra.gmra.mrb[0].mxu1 %v84_v27 }
  0x6f   :  { %452 = vmatprep.mubr.f32.mxu0 %v81_v28  ;;  %458 = vmatprep.mubr.f32.mxu1 %v85_v29 }
  0x72   :  { %453 = vmatmul.mubr.f32.gmra.mrb[2].mxu0 %v82_v30  ;;  %459 = vmatmul.mubr.f32.gmra.mrb[2].mxu1 %v86_v31 }
 0x141   :  { %v451_v33 = vpop.f32.mrb[0].mxu0  ;;  %v457_v34 = vpop.f32.mrb[0].mxu1 }
 0x142   :  { %v182_v35 = vadd.f32 %v451_v33, %v374_v32  ;;  %v202_v36 = vadd.f32 %v457_v34, %v374_v32  ;;  %v176_v37 = vpop.f32.mrb[1].mxu0  ;;  %v196_v38 = vpop.f32.mrb[1].mxu1 }
 0x143   :  { %v177_v39 = vadd.f32 %v374_v32, %v176_v37  ;;  %v197_v40 = vadd.f32 %v374_v32, %v196_v38 }
 0x144   :  { %216 = vst [vmem:[#allocation2 + $0x8] sm:$0xff] %v182_v35  ;;  %220 = vst [vmem:[#allocation2 + $0x28] sm:$0xff] %v202_v36 }
 0x145   :  { %215 = vst [vmem:[#allocation2] sm:$0xff] %v177_v39  ;;  %219 = vst [vmem:[#allocation2 + $0x20] sm:$0xff] %v197_v40  ;;  %v454_v41 = vpop.f32.mrb[2].mxu0  ;;  %v460_v42 = vpop.f32.mrb[2].mxu1 }
 0x146   :  { %v192_v43 = vadd.f32 %v454_v41, %v374_v32  ;;  %v212_v44 = vadd.f32 %v460_v42, %v374_v32  ;;  %v186_v45 = vpop.f32.mrb[3].mxu0  ;;  %v206_v46 = vpop.f32.mrb[3].mxu1 }
 0x147   :  { %v187_v47 = vadd.f32 %v374_v32, %v186_v45  ;;  %v207_v48 = vadd.f32 %v374_v32, %v206_v46 }
 0x148   :  { %218 = vst [vmem:[#allocation2 + $0x18] sm:$0xff] %v192_v43  ;;  %222 = vst [vmem:[#allocation2 + $0x38] sm:$0xff] %v212_v44 }
 0x149   :  { %217 = vst [vmem:[#allocation2 + $0x10] sm:$0xff] %v187_v47  ;;  %221 = vst [vmem:[#allocation2 + $0x30] sm:$0xff] %v207_v48 }
 0x14a LB: > { %v234_v50 = vld [vmem:[#allocation9] sm:$0xff]  ;;  %v235_v51 = vld [vmem:[#allocation9 + $0x8] sm:$0xff]  ;;  %v236_v52 = vld [vmem:[#allocation9 + $0x10] sm:$0xff]  ;;  %v762_v53 = vmov 0.0|0.0   ;;  %vm763_vm0 = vmmov 0   ;;  %v764_v56 = vmov 0.0   ;;  %s754_s3 = sphi %s863_s3, %s229_s3   ;;  %v750_v49 = vphi %v861_v49, %v908_v49  }
 0x14b   : > { %528 = vmatprep.subr.bf16.mxu0 %v762_v53  ;;  %v529_v54 = vpack.c.bf16 %v235_v51, %v234_v50  ;;  %v237_v55 = vld [vmem:[#allocation9 + $0x18] sm:$0xff]  ;;  %493 = vmatprep.mubr.msk.f32.mxu0 %vm763_vm0, %v764_v56  ;;  %v238_v58 = vld [vmem:[#allocation9 + $0x20] sm:$0xff]  ;;  %v239_v59 = vld [vmem:[#allocation9 + $0x28] sm:$0xff]  ;;  %s375_s17 = sshll.u32 %s754_s3, 3  ;;  %s229_s3 = sadd.s32 1, %s754_s3  }
 0x14c   : > { %v532_v57 = vpack.c.bf16 %v237_v55, %v236_v52  ;;  %v535_v60 = vpack.c.bf16 %v239_v59, %v238_v58  ;;  %v240_v61 = vld [vmem:[#allocation9 + $0x30] sm:$0xff]  ;;  %v241_v62 = vld [vmem:[#allocation9 + $0x38] sm:$0xff]  ;;  %v242_v0 = vld [vmem:[#allocation9 + $0x40] sm:$0xff]  ;;  %s232_s18 = scalar_lea.vmem [#allocation2], %s375_s17  ;;  %s322_s19 = scalar_lea.vmem [#allocation12], %s375_s17 }
 0x14d   : > { %530 = vmatpush3.bf16.msra.mxu0 %v529_v54  ;;  %v538_v63 = vpack.c.bf16 %v241_v62, %v240_v61  ;;  %v243_v1 = vld [vmem:[#allocation9 + $0x48] sm:$0xff]  ;;  %v244_v3 = vld [vmem:[#allocation9 + $0x50] sm:$0xff]  ;;  %v245_v4 = vld [vmem:[#allocation9 + $0x58] sm:$0xff]  ;;  %p226_p4 = scmp.ge.s32.totalorder %s229_s3, 8  }
 0x14e   : > { %531 = vmatprep.subr.bf16.mxu0 %v762_v53  ;;  %v541_v2 = vpack.c.bf16 %v243_v1, %v242_v0  ;;  %v544_v5 = vpack.c.bf16 %v245_v4, %v244_v3  ;;  %v246_v6 = vld [vmem:[#allocation9 + $0x60] sm:$0xff]  ;;  %v247_v7 = vld [vmem:[#allocation9 + $0x68] sm:$0xff]  ;;  %v248_v9 = vld [vmem:[#allocation9 + $0x70] sm:$0xff]  ;;  %s765_s20 = smov (%p226_p4), [#allocation12]   ;;  %s766_s23 = smov (%p226_p4), [#allocation13]  }
 0x14f   : > { %v547_v8 = vpack.c.bf16 %v247_v7, %v246_v6  ;;  %v249_v10 = vld [vmem:[#allocation9 + $0x78] sm:$0xff]  ;;  %s334_s22 = sshll.u32 (%p226_p4), %s765_s20, 4  ;;  %s347_s24 = sshll.u32 (%p226_p4), %s766_s23, 4  ;;  %s335_s22 = int_to_ptr.vmem [resolvable:$true] %s334_s22  ;;  %s348_s24 = int_to_ptr.vmem [resolvable:$true] %s347_s24 }
 0x150   : > { %v550_v11 = vpack.c.bf16 %v249_v10, %v248_v9  ;;  %v233_v12 = vld [vmem:[%s232_s18] sm:$0xff]  ;;  %s686_s25 = scalar_lea.vmem (%p226_p4), %s335_s22, 1024  ;;  %p691_p6 = scmp.lt.s32.totalorder (%p226_p4), %s335_s22, %s335_s22 }
 0x151   : > { %533 = vmatpush3.bf16.msra.mxu0 %v532_v57  ;;  %p687_p5 = scmp.ne.s32.totalorder (%p226_p4), %s335_s22, %s686_s25  ;;  %p692_p7 = scmp.lt.s32.totalorder (%p226_p4), %s686_s25, %s686_s25 }
 0x152   : > { %534 = vmatprep.subr.bf16.mxu0 %v762_v53 }
 0x153   :  { %p693_p8 = por (%p226_p4), %p692_p7, %p691_p6 }
 0x155   : > { %536 = vmatpush3.bf16.msra.mxu0 %v535_v60  ;;  %p694_p9 = pnand (%p226_p4), %p693_p8, %p687_p5 }
 0x156   : > { %537 = vmatprep.subr.bf16.mxu0 %v762_v53 }
 0x159   : > { %539 = vmatpush3.bf16.msra.mxu0 %v538_v63 }
 0x15a   : > { %540 = vmatprep.subr.bf16.mxu0 %v762_v53 }
 0x15d   : > { %542 = vmatpush3.bf16.msra.mxu0 %v541_v2 }
 0x15e   : > { %543 = vmatprep.subr.bf16.mxu0 %v762_v53 }
 0x161   : > { %545 = vmatpush3.bf16.msra.mxu0 %v544_v5 }
 0x162   : > { %546 = vmatprep.subr.bf16.mxu0 %v762_v53 }
 0x165   : > { %548 = vmatpush3.bf16.msra.mxu0 %v547_v8 }
 0x166   : > { %549 = vmatprep.subr.bf16.mxu0 %v762_v53 }
 0x169   : > { %551 = vmatpush3.bf16.msra.mxu0 %v550_v11 }
 0x16c   : > { %494 = vmatmul.mubr.f32.vlgmr.msra.gmra.mrb[0].mxu0 %v750_v49 }
 0x23f   : > { %v316_v13 = vpop.f32.mrb[0].mxu0 }
 0x240   : > { %v320_v14 = vadd.f32 %v316_v13, %v233_v12  ;;  %v495_v15 = vpop.f32.mrb[1].mxu0 }
 0x242   : > { %596 = vtanh.f32 %v320_v14 }
 0x247   :  { %228 = sbr.rel (!%p226_p4) target bundleno = 330 (0x14a), region = 77 }
 0x24c   : > { %v597_v16 = vpop.eup %596  }
 0x24d   : > { %323 = vst [vmem:[%s322_s19] sm:$0xff] %v597_v16  ;;  %v908_v49 = vmov %v597_v16  ;;  %328 = vst [vmem:[#allocation13] sm:$0xff] (%p226_p4), %v597_v16 }
 0x24e   :  { %697 = shalt.err (!%p694_p9)
}
 0x24f   :  { %s698_s28 = scalar_lea.hbm %s906_s4, 1024 }
 0x250   :  { %p699_p10 = scmp.ne.s32.totalorder %s906_s4, %s698_s28  ;;  %p702_p11 = scmp.lt.u32.totalorder %s698_s28, %s906_s4 }
 0x252   :  { %p704_p12 = pnand %p702_p11, %p699_p10 }
 0x254   :  { %707 = shalt.err (!%p704_p12)
}
 0x255   :  { %340 = dma.vmem_to_hbm [thread:$0]  %s335_s22, 1024, %s906_s4, [#allocation6], %s758_s30, %s758_s30, %s759_s6  }
 0x256   :  { %s708_s10 = scalar_lea.vmem %s348_s24, 128  ;;  %p713_p0 = scmp.lt.s32.totalorder %s348_s24, %s348_s24 }
 0x257   :  { %p709_p13 = scmp.ne.s32.totalorder %s348_s24, %s708_s10  ;;  %p714_p1 = scmp.lt.s32.totalorder %s708_s10, %s708_s10 }
 0x259   :  { %p715_p2 = por %p714_p1, %p713_p0 }
 0x25b   :  { %p716_p3 = pnand %p715_p2, %p709_p13 }
 0x25d   :  { %719 = shalt.err (!%p716_p3)
}
 0x25e   :  { %s720_s13 = scalar_lea.hbm %s907_s5, 128 }
 0x25f   :  { %p721_p4 = scmp.ne.s32.totalorder %s907_s5, %s720_s13  ;;  %p724_p5 = scmp.lt.u32.totalorder %s720_s13, %s907_s5 }
 0x261   :  { %p726_p6 = pnand %p724_p5, %p721_p4 }
 0x263   :  { %729 = shalt.err (!%p726_p6)
}
 0x264   :  { %350 = dma.vmem_to_hbm [thread:$0]  %s348_s24, 128, %s907_s5, [#allocation14]  }
 0x265   :  { %744 = dma.done.wait [#allocation6], 1024  }
 0x266   :  { %745 = vsyncadd [#allocation6], 4294966272 }
 0x267   :  { %746 = dma.done.wait [#allocation14], 128  }
 0x268   :  { %747 = vsyncadd [#allocation14], 4294967168 }
 0x269   :  { %357 = vsyncpa [#allocation5], 1 }
 0x26a   :  { %358 = vsyncpa [#allocation8], 1 }
 0x26b   :  { %359 = vsyncpa [#allocation11], 1 }
 0x26c   :  { %360 = vsyncpa [#allocation6], 1 }
 0x26d   :  { %361 = vsyncpa [#allocation14], 1 }

</bundles_post_ra>
